<compile_context>
chip_gen: v7x
topology: tpu7x:2x2x1
jax: 0.10.0
libtpu: 0.0.40
codegen_flags: <defaults>
</compile_context>

<pallas_src>
import functools
import math

import jax
import jax.numpy as jnp
from jax.experimental import pallas as pl
from jax.experimental.pallas import tpu as pltpu


def _default_vmem_limit():
    """Generation-aware scoped-VMEM limit: ~48 MiB on 128-MiB parts (v5e/v6e),
    ~36 MiB on 64-MiB parts (v7x) to leave headroom for Mosaic internal scratch."""
    try:
        cap = getattr(pltpu.get_tpu_info(), "vmem_capacity_bytes", None)
    except Exception:
        cap = None
    if cap is None:
        return 36 * 1024 * 1024
    return 48 * 1024 * 1024 if cap > 96 * 1024 * 1024 else 36 * 1024 * 1024


_VMEM_LIMIT = _default_vmem_limit()


def _pick_sub(dim):
    """Second-minor tile: largest MXU/sublane-friendly divisor, else the full dim."""
    for t in (512, 256, 128, 64, 32, 16):
        if dim % t == 0:
            return t
    return dim


def _pick_lane(dim):
    """Lane (minor) tile: largest 128-multiple divisor, else the full dim."""
    for t in (512, 384, 256, 128):
        if dim % t == 0:
            return t
    return dim


def _gelu(x):
    # TODO(synk): exact erf-based GELU; tanh approximation used in-kernel for
    #             guaranteed Mosaic lowering (~1e-3 relative difference).
    return jax.nn.gelu(x, approximate=True)


# ----------------------------------------------------------------------------
# Tiled dense matmul: bf16 operands, f32 accumulation, fused bias (+ activation)
# ----------------------------------------------------------------------------
def _dense_kernel(x_ref, w_ref, b_ref, o_ref, acc_ref, *, activation):
    k = pl.program_id(2)

    @pl.when(k == 0)
    def _init():
        acc_ref[...] = jnp.zeros_like(acc_ref)

    acc_ref[...] += jnp.dot(x_ref[...], w_ref[...],
                            preferred_element_type=jnp.float32)

    @pl.when(k == pl.num_programs(2) - 1)
    def _epilogue():
        y = acc_ref[...] + b_ref[...]            # f32 epilogue math
        if activation is not None:
            y = activation(y)
        o_ref[...] = y.astype(o_ref.dtype)       # bf16 store


def dense(x2d, w, b, activation=None):
    """y = act(x2d @ w + b); x2d:[M,K] bf16, w:[K,N] bf16, b:[N] f32 -> [M,N] bf16."""
    M, K = x2d.shape
    Kw, N = w.shape
    assert K == Kw
    tm, tk, tn = _pick_sub(M), _pick_lane(K), _pick_lane(N)
    grid = (M // tm, N // tn, K // tk)
    cost = pl.CostEstimate(
        flops=2 * M * N * K,
        transcendentals=(M * N if activation is not None else 0),
        bytes_accessed=2 * (M * K + K * N + M * N) + 4 * N,
    )
    return pl.pallas_call(
        functools.partial(_dense_kernel, activation=activation),
        grid=grid,
        in_specs=[
            pl.BlockSpec((tm, tk), lambda i, j, k: (i, k)),
            pl.BlockSpec((tk, tn), lambda i, j, k: (k, j)),
            pl.BlockSpec((1, tn), lambda i, j, k: (0, j)),
        ],
        out_specs=pl.BlockSpec((tm, tn), lambda i, j, k: (i, j)),
        out_shape=jax.ShapeDtypeStruct((M, N), jnp.bfloat16),
        scratch_shapes=[pltpu.VMEM((tm, tn), jnp.float32)],
        compiler_params=pltpu.CompilerParams(
            dimension_semantics=("parallel", "parallel", "arbitrary"),
            vmem_limit_bytes=_VMEM_LIMIT),
        cost_estimate=cost,
    )(x2d, w, b.reshape(1, N))


# ----------------------------------------------------------------------------
# Dense matmul with fused bias + residual-add + LayerNorm epilogue (tn == N)
# ----------------------------------------------------------------------------
def _dense_addln_kernel(x_ref, w_ref, b_ref, r_ref, g_ref, bb_ref, o_ref,
                        acc_ref, *, eps):
    k = pl.program_id(1)

    @pl.when(k == 0)
    def _init():
        acc_ref[...] = jnp.zeros_like(acc_ref)

    acc_ref[...] += jnp.dot(x_ref[...], w_ref[...],
                            preferred_element_type=jnp.float32)

    @pl.when(k == pl.num_programs(1) - 1)
    def _epilogue():
        y = acc_ref[...] + b_ref[...] + r_ref[...].astype(jnp.float32)
        mu = jnp.mean(y, axis=-1, keepdims=True)
        yc = y - mu
        var = jnp.mean(yc * yc, axis=-1, keepdims=True)
        o_ref[...] = (yc * jax.lax.rsqrt(var + eps) * g_ref[...]
                      + bb_ref[...]).astype(o_ref.dtype)


def dense_addln(x2d, w, b, res2d, gamma, beta, eps=1e-12):
    """LayerNorm(x2d @ w + b + res2d); whole output rows per tile (tn == N)."""
    M, K = x2d.shape
    Kw, N = w.shape
    assert K == Kw and res2d.shape == (M, N)
    tm, tk = _pick_sub(M), _pick_lane(K)
    grid = (M // tm, K // tk)
    cost = pl.CostEstimate(
        flops=2 * M * N * K + 10 * M * N,
        transcendentals=M,
        bytes_accessed=2 * (M * K + K * N + 2 * M * N) + 12 * N,
    )
    return pl.pallas_call(
        functools.partial(_dense_addln_kernel, eps=eps),
        grid=grid,
        in_specs=[
            pl.BlockSpec((tm, tk), lambda i, k: (i, k)),
            pl.BlockSpec((tk, N), lambda i, k: (k, 0)),
            pl.BlockSpec((1, N), lambda i, k: (0, 0)),
            pl.BlockSpec((tm, N), lambda i, k: (i, 0)),
            pl.BlockSpec((1, N), lambda i, k: (0, 0)),
            pl.BlockSpec((1, N), lambda i, k: (0, 0)),
        ],
        out_specs=pl.BlockSpec((tm, N), lambda i, k: (i, 0)),
        out_shape=jax.ShapeDtypeStruct((M, N), jnp.bfloat16),
        scratch_shapes=[pltpu.VMEM((tm, N), jnp.float32)],
        compiler_params=pltpu.CompilerParams(
            dimension_semantics=("parallel", "arbitrary"),
            vmem_limit_bytes=_VMEM_LIMIT),
        cost_estimate=cost,
    )(x2d, w, b.reshape(1, N), res2d, gamma.reshape(1, N), beta.reshape(1, N))


# ----------------------------------------------------------------------------
# Attention block: grid=(B, nH); per-head BlockSpecs, fused Wo projection +
# bias + residual + LayerNorm; single lane-dense [S, H] store per batch row.
# ----------------------------------------------------------------------------
def _attn_block_kernel(q_ref, k_ref, v_ref, bias_ref, wo_ref, bo_ref,
                       res_ref, g_ref, bb_ref, o_ref, acc_ref, *, scale, eps):
    h = pl.program_id(1)

    @pl.when(h == 0)
    def _init():
        acc_ref[...] = jnp.zeros_like(acc_ref)

    q = q_ref[0, 0]                                    # [S, Dh] bf16
    kk = k_ref[0, 0]
    v = v_ref[0, 0]
    # pre-scale q (S*Dh multiplies instead of S*S on the score matrix)
    qs = (q.astype(jnp.float32) * scale).astype(q.dtype)
    s = jax.lax.dot_general(qs, kk, (((1,), (1,)), ((), ())),
                            preferred_element_type=jnp.float32)   # [S, S] f32
    s = s + bias_ref[0]                                # additive key-mask bias
    # softmax in f32 (v5e has no bf16 VPU/EUP path)
    s = s - jnp.max(s, axis=-1, keepdims=True)
    p = jnp.exp(s)
    p = p * pl.reciprocal(jnp.sum(p, axis=-1, keepdims=True), approx=True)
    ctx = jnp.dot(p.astype(v.dtype), v,
                  preferred_element_type=jnp.float32)              # [S, Dh] f32
    # fused output projection: accumulate ctx @ Wo[h*Dh:(h+1)*Dh, :] into [S, H]
    acc_ref[...] += jnp.dot(ctx.astype(wo_ref.dtype), wo_ref[...],
                            preferred_element_type=jnp.float32)

    @pl.when(h == pl.num_programs(1) - 1)
    def _epilogue():
        y = acc_ref[...] + bo_ref[...] + res_ref[0].astype(jnp.float32)
        mu = jnp.mean(y, axis=-1, keepdims=True)
        yc = y - mu
        var = jnp.mean(yc * yc, axis=-1, keepdims=True)
        o_ref[0] = (yc * jax.lax.rsqrt(var + eps) * g_ref[...]
                    + bb_ref[...]).astype(o_ref.dtype)
    # TODO(synk): tile the KV axis flash-style (online softmax) for real S.


def attention_block(q, k, v, mask_bias, wo, bo, res, gamma, beta, eps=1e-12):
    """q/k/v: [B,nH,S,Dh] bf16; returns LayerNorm(attn@Wo + bo + res): [B,S,H] bf16."""
    B, nH, S, Dh = q.shape
    H = nH * Dh
    scale = 1.0 / math.sqrt(Dh)
    cost = pl.CostEstimate(
        flops=2 * B * nH * S * (2 * S * Dh + Dh * H) + 12 * B * S * H,
        transcendentals=B * nH * S * S,
        bytes_accessed=2 * (3 * B * nH * S * Dh + 2 * B * S * H + H * H)
                       + 4 * (B * S + 3 * H),
    )
    return pl.pallas_call(
        functools.partial(_attn_block_kernel, scale=scale, eps=eps),
        grid=(B, nH),
        in_specs=[
            pl.BlockSpec((1, 1, S, Dh), lambda b, h: (b, h, 0, 0)),   # q head h
            pl.BlockSpec((1, 1, S, Dh), lambda b, h: (b, h, 0, 0)),   # k head h
            pl.BlockSpec((1, 1, S, Dh), lambda b, h: (b, h, 0, 0)),   # v head h
            pl.BlockSpec((1, 1, S), lambda b, h: (b, 0, 0)),          # mask bias
            pl.BlockSpec((Dh, H), lambda b, h: (h, 0)),               # Wo rows of head h
            pl.BlockSpec((1, H), lambda b, h: (0, 0)),                # bo
            pl.BlockSpec((1, S, H), lambda b, h: (b, 0, 0)),          # residual
            pl.BlockSpec((1, H), lambda b, h: (0, 0)),                # ln gamma
            pl.BlockSpec((1, H), lambda b, h: (0, 0)),                # ln beta
        ],
        out_specs=pl.BlockSpec((1, S, H), lambda b, h: (b, 0, 0)),
        out_shape=jax.ShapeDtypeStruct((B, S, H), jnp.bfloat16),
        scratch_shapes=[pltpu.VMEM((S, H), jnp.float32)],
        compiler_params=pltpu.CompilerParams(
            dimension_semantics=("parallel", "arbitrary"),
            vmem_limit_bytes=_VMEM_LIMIT),
        cost_estimate=cost,
    )(q, k, v, mask_bias, wo, bo.reshape(1, H), res,
      gamma.reshape(1, H), beta.reshape(1, H))


# ----------------------------------------------------------------------------
# Cosine-similarity + classifier + sigmoid head, tiled over B
# ----------------------------------------------------------------------------
def _head_kernel(a_ref, b_ref, w1_ref, b1_ref, w2_ref, b2_ref, o_ref):
    a = a_ref[0].astype(jnp.float32)                 # [L, H]
    b = b_ref[0].astype(jnp.float32)
    dot = jnp.sum(a * b, axis=0, keepdims=True)      # [1, H] (CosineSimilarity dim=1)
    na2 = jnp.sum(a * a, axis=0, keepdims=True)
    nb2 = jnp.sum(b * b, axis=0, keepdims=True)
    denom = jnp.maximum(jnp.sqrt(na2 * nb2), 1e-8)
    s = dot * pl.reciprocal(denom, approx=True)      # [1, H]
    h = jnp.dot(s.astype(w1_ref.dtype), w1_ref[...],
                preferred_element_type=jnp.float32) + b1_ref[...]
    # dropout -> identity at inference
    y = jnp.dot(h.astype(w2_ref.dtype), w2_ref[...],
                preferred_element_type=jnp.float32) + b2_ref[...]
    o_ref[0] = jax.nn.sigmoid(y).astype(o_ref.dtype)


def cosine_classifier_head(a, b, w1, b1, w2, b2):
    """a, b: [B, L, H] bf16 -> sigmoid(classifier_1(classifier(cos))) : [B, NL] f32."""
    B, L, Hd = a.shape
    C = w1.shape[1]
    NL = w2.shape[1]
    out = pl.pallas_call(
        _head_kernel,
        grid=(B,),
        in_specs=[
            pl.BlockSpec((1, L, Hd), lambda i: (i, 0, 0)),
            pl.BlockSpec((1, L, Hd), lambda i: (i, 0, 0)),
            pl.BlockSpec((Hd, C), lambda i: (0, 0)),
            pl.BlockSpec((1, C), lambda i: (0, 0)),
            pl.BlockSpec((C, NL), lambda i: (0, 0)),
            pl.BlockSpec((1, NL), lambda i: (0, 0)),
        ],
        out_specs=pl.BlockSpec((1, 1, NL), lambda i: (i, 0, 0)),
        out_shape=jax.ShapeDtypeStruct((B, 1, NL), jnp.float32),
        compiler_params=pltpu.CompilerParams(
            dimension_semantics=("parallel",),
            vmem_limit_bytes=_VMEM_LIMIT),
    )(a, b, w1, b1.reshape(1, C), w2, b2.reshape(1, NL))
    return out.reshape(B, NL)


# ----------------------------------------------------------------------------
# Plain-JAX glue (embedding gathers + embedding LayerNorm + reshapes)
# ----------------------------------------------------------------------------
def layer_norm(x, gamma, beta, eps=1e-12):
    mu = jnp.mean(x, axis=-1, keepdims=True)
    var = jnp.mean((x - mu) ** 2, axis=-1, keepdims=True)
    return (x - mu) / jnp.sqrt(var + eps) * gamma + beta


def bert_forward(p, input_ids, attn_mask, cfg):
    """Returns list of hidden states: [embeddings, layer1, ..., layerN] (bf16)."""
    B, S = input_ids.shape
    H, nH, Dh = cfg["H"], cfg["nH"], cfg["Dh"]

    pos = jnp.arange(S)
    # TODO(synk): embedding table gathers stay in plain JAX (no clean Pallas gather here)
    x = (p["word_emb"][input_ids]
         + p["pos_emb"][pos][None, :, :]
         + p["type_emb"][0][None, None, :])
    x = layer_norm(x, p["emb_ln_g"], p["emb_ln_b"]).astype(jnp.bfloat16)
    hidden_states = [x]

    # additive mask bias, passed once as [B, 1, S] (no per-head broadcast in HBM)
    mask_bias = ((1.0 - attn_mask.astype(jnp.float32)) * -10000.0)[:, None, :]

    for lp in p["layers"]:
        x2 = x.reshape(B * S, H)
        qkv = dense(x2, lp["Wqkv"], lp["bqkv"]).reshape(B, S, 3, nH, Dh)
        # Head-major layout so the (B, nH) attention grid can BlockSpec per head.
        # One XLA transpose of the QKV activation; it pays for itself since the
        # fused attention kernel deletes the attn-out and add-LN HBM round trips.
        q = jnp.transpose(qkv[:, :, 0], (0, 2, 1, 3))   # [B, nH, S, Dh]
        k = jnp.transpose(qkv[:, :, 1], (0, 2, 1, 3))
        v = jnp.transpose(qkv[:, :, 2], (0, 2, 1, 3))
        x1 = attention_block(q, k, v, mask_bias, lp["Wo"], lp["bo"], x,
                             lp["attn_ln_g"], lp["attn_ln_b"]).reshape(B * S, H)
        inter = dense(x1, lp["Wi"], lp["bi"], activation=_gelu)       # fused GELU
        x = dense_addln(inter, lp["Wo2"], lp["bo2"], x1,
                        lp["out_ln_g"], lp["out_ln_b"]).reshape(B, S, H)
        hidden_states.append(x)
    return hidden_states


def bert_qa_forward(p, ids0, mask0, ids1, mask1, cfg):
    hs0 = bert_forward(p, ids0, mask0, cfg)
    hs1 = bert_forward(p, ids1, mask1, cfg)
    a = jnp.concatenate(hs0[:4], axis=1)       # [B, 4*S, H] (first 4 hidden states)
    b = jnp.concatenate(hs1[:4], axis=1)
    # H stays on lanes; cosine reduction over axis=1 happens inside the kernel
    return cosine_classifier_head(a, b, p["W1"], p["b1"], p["W2"], p["b2"])


# ----------------------------------------------------------------------------
# Deterministic parameter init (matmul weights bf16; biases/LN/embeddings f32)
# ----------------------------------------------------------------------------
def init_params(key, cfg):
    H, I, V, P, NLYR = cfg["H"], cfg["I"], cfg["V"], cfg["P"], cfg["num_layers"]

    keys = iter(jax.random.split(key, 64))

    def w(shape, scale=0.02, dtype=jnp.bfloat16):
        return (jax.random.normal(next(keys), shape, dtype=jnp.float32) * scale).astype(dtype)

    p = {
        "word_emb": w((V, H), dtype=jnp.float32),
        "pos_emb": w((P, H), dtype=jnp.float32),
        "type_emb": w((2, H), dtype=jnp.float32),
        "emb_ln_g": jnp.ones((H,), jnp.float32),
        "emb_ln_b": jnp.zeros((H,), jnp.float32),
        "layers": [],
        "W1": w((H, 256), scale=math.sqrt(2.0 / (H + 256))),
        "b1": jnp.zeros((256,), jnp.float32),
        "W2": w((256, cfg["num_labels"]),
                scale=math.sqrt(2.0 / (256 + cfg["num_labels"]))),
        "b2": jnp.zeros((cfg["num_labels"],), jnp.float32),
    }
    for _ in range(NLYR):
        p["layers"].append(
            {
                "Wqkv": w((H, 3 * H)), "bqkv": jnp.zeros((3 * H,), jnp.float32),
                "Wo": w((H, H)), "bo": jnp.zeros((H,), jnp.float32),
                "attn_ln_g": jnp.ones((H,), jnp.float32),
                "attn_ln_b": jnp.zeros((H,), jnp.float32),
                "Wi": w((H, I)), "bi": jnp.zeros((I,), jnp.float32),
                "Wo2": w((I, H)), "bo2": jnp.zeros((H,), jnp.float32),
                "out_ln_g": jnp.ones((H,), jnp.float32),
                "out_ln_b": jnp.zeros((H,), jnp.float32),
            }
        )
    return p


# ----------------------------------------------------------------------------
if __name__ == "__main__":
    cfg = dict(
        B=2, S=8, H=32, nH=4, Dh=8, I=64,
        V=100, P=64, num_layers=3, num_labels=1,
    )

    key = jax.random.PRNGKey(0)
    kp, k0, k1 = jax.random.split(key, 3)
    params = init_params(kp, cfg)

    input_ids_0 = jax.random.randint(k0, (cfg["B"], cfg["S"]), 0, cfg["V"], dtype=jnp.int32)
    input_ids_1 = jax.random.randint(k1, (cfg["B"], cfg["S"]), 0, cfg["V"], dtype=jnp.int32)
    attention_mask_0 = jnp.ones((cfg["B"], cfg["S"]), dtype=jnp.int32)
    attention_mask_1 = jnp.concatenate(
        [jnp.ones((cfg["B"], cfg["S"] - 2), jnp.int32),
         jnp.zeros((cfg["B"], 2), jnp.int32)], axis=1)

    fwd = jax.jit(functools.partial(bert_qa_forward, cfg=cfg))
    out = fwd(params, input_ids_0, attention_mask_0, input_ids_1, attention_mask_1)
    out = jax.block_until_ready(out)

    assert out.shape == (cfg["B"], cfg["num_labels"])
    assert bool(jnp.all(jnp.isfinite(out)))
    assert bool(jnp.all((out >= 0.0) & (out <= 1.0)))
    print("KERNEL_OK")
</pallas_src>

<mosaic_0001>
module attributes {stable_mosaic.version = 11 : i64} {
  func.func @_dense_kernel(%arg0: i32, %arg1: i32, %arg2: i32, %arg3: memref<16x32xbf16, #tpu.memory_space<vmem>>, %arg4: memref<32x96xbf16, #tpu.memory_space<vmem>>, %arg5: memref<1x96xf32, #tpu.memory_space<vmem>>, %arg6: memref<16x96xbf16, #tpu.memory_space<vmem>>, %arg7: memref<16x96xf32, #tpu.memory_space<vmem>>) attributes {dimension_semantics = [#tpu.dimension_semantics<parallel>, #tpu.dimension_semantics<parallel>, #tpu.dimension_semantics<arbitrary>], iteration_bounds = array<i64: 1, 1, 1>, scalar_prefetch = 0 : i64, scratch_operands = 1 : i64, tpu.core_type = #tpu.core_type<tc>, window_params = [{transform_indices = @transform_0, window_bounds = array<i64: 16, 32>}, {transform_indices = @transform_1, window_bounds = array<i64: 32, 96>}, {transform_indices = @transform_2, window_bounds = array<i64: 1, 96>}, {transform_indices = @transform_3, window_bounds = array<i64: 16, 96>}]} {
    %c0_i32 = arith.constant 0 : i32
    %0 = arith.cmpi eq, %arg2, %c0_i32 : i32
    %1 = arith.extui %0 : i1 to i32
    %c0_i32_0 = arith.constant 0 : i32
    %2 = arith.cmpi ne, %1, %c0_i32_0 : i32
    scf.if %2 {
      %cst_10 = arith.constant 0.000000e+00 : f32
      %12 = vector.broadcast %cst_10 : f32 to vector<16x96xf32>
      %c0_11 = arith.constant 0 : index
      %c0_12 = arith.constant 0 : index
      %13 = vector.load %arg7[%c0_11, %c0_12] : memref<16x96xf32, #tpu.memory_space<vmem>>, vector<16x96xf32>
      tpu.vector_store %arg7[%c0_11, %c0_12], %12 {strides = array<i32>} : memref<16x96xf32, #tpu.memory_space<vmem>>, vector<16x96xf32>,
    } else {
    }
    %c0 = arith.constant 0 : index
    %c0_1 = arith.constant 0 : index
    %3 = vector.load %arg7[%c0, %c0_1] : memref<16x96xf32, #tpu.memory_space<vmem>>, vector<16x96xf32>
    %c0_2 = arith.constant 0 : index
    %c0_3 = arith.constant 0 : index
    %4 = vector.load %arg3[%c0_2, %c0_3] : memref<16x32xbf16, #tpu.memory_space<vmem>>, vector<16x32xbf16>
    %c0_4 = arith.constant 0 : index
    %c0_5 = arith.constant 0 : index
    %5 = vector.load %arg4[%c0_4, %c0_5] : memref<32x96xbf16, #tpu.memory_space<vmem>>, vector<32x96xbf16>
    %cst = arith.constant dense<0.000000e+00> : vector<16x96xf32>
    %6 = tpu.matmul %4, %5, %cst {dimension_numbers = #tpu.dot_dimension_numbers<[1], [0], [0], [1], [0, 0, 1, 1], [], []>} : vector<16x32xbf16>, vector<32x96xbf16>, vector<16x96xf32> -> vector<16x96xf32>
    %7 = arith.addf %3, %6 : vector<16x96xf32>
    %c0_6 = arith.constant 0 : index
    %c0_7 = arith.constant 0 : index
    %8 = vector.load %arg7[%c0_6, %c0_7] : memref<16x96xf32, #tpu.memory_space<vmem>>, vector<16x96xf32>
    tpu.vector_store %arg7[%c0_6, %c0_7], %7 {strides = array<i32>} : memref<16x96xf32, #tpu.memory_space<vmem>>, vector<16x96xf32>,
    %c0_i32_8 = arith.constant 0 : i32
    %9 = arith.cmpi eq, %arg2, %c0_i32_8 : i32
    %10 = arith.extui %9 : i1 to i32
    %c0_i32_9 = arith.constant 0 : i32
    %11 = arith.cmpi ne, %10, %c0_i32_9 : i32
    scf.if %11 {
      %c0_10 = arith.constant 0 : index
      %c0_11 = arith.constant 0 : index
      %12 = vector.load %arg7[%c0_10, %c0_11] : memref<16x96xf32, #tpu.memory_space<vmem>>, vector<16x96xf32>
      %c0_12 = arith.constant 0 : index
      %c0_13 = arith.constant 0 : index
      %13 = vector.load %arg5[%c0_12, %c0_13] : memref<1x96xf32, #tpu.memory_space<vmem>>, vector<1x96xf32>
      %14 = vector.broadcast %13 : vector<1x96xf32> to vector<16x96xf32>
      %15 = arith.addf %12, %14 : vector<16x96xf32>
      %16 = arith.truncf %15 : vector<16x96xf32> to vector<16x96xbf16>
      %c0_14 = arith.constant 0 : index
      %c0_15 = arith.constant 0 : index
      %17 = vector.load %arg6[%c0_14, %c0_15] : memref<16x96xbf16, #tpu.memory_space<vmem>>, vector<16x96xbf16>
      tpu.vector_store %arg6[%c0_14, %c0_15], %16 {strides = array<i32>} : memref<16x96xbf16, #tpu.memory_space<vmem>>, vector<16x96xbf16>,
    } else {
    }
    return
  }
  func.func @transform_0(%arg0: i32, %arg1: i32, %arg2: i32) -> (i32, i32) {
    %c0_i32 = arith.constant 0 : i32
    return %arg0, %arg2 : i32, i32
  }
  func.func @transform_1(%arg0: i32, %arg1: i32, %arg2: i32) -> (i32, i32) {
    %c0_i32 = arith.constant 0 : i32
    return %arg2, %arg1 : i32, i32
  }
  func.func @transform_2(%arg0: i32, %arg1: i32, %arg2: i32) -> (i32, i32) {
    %c0_i32 = arith.constant 0 : i32
    %c0_i32_0 = arith.constant 0 : i32
    return %c0_i32, %arg1 : i32, i32
  }
  func.func @transform_3(%arg0: i32, %arg1: i32, %arg2: i32) -> (i32, i32) {
    %c0_i32 = arith.constant 0 : i32
    return %arg0, %arg1 : i32, i32
  }
}

module attributes {stable_mosaic.version = 11 : i64} {
  func.func @_attn_block_kernel(%arg0: i32, %arg1: i32, %arg2: memref<1x1x8x8xbf16, #tpu.memory_space<vmem>>, %arg3: memref<1x1x8x8xbf16, #tpu.memory_space<vmem>>, %arg4: memref<1x1x8x8xbf16, #tpu.memory_space<vmem>>, %arg5: memref<1x1x8xf32, #tpu.memory_space<vmem>>, %arg6: memref<8x32xbf16, #tpu.memory_space<vmem>>, %arg7: memref<1x32xf32, #tpu.memory_space<vmem>>, %arg8: memref<1x8x32xbf16, #tpu.memory_space<vmem>>, %arg9: memref<1x32xf32, #tpu.memory_space<vmem>>, %arg10: memref<1x32xf32, #tpu.memory_space<vmem>>, %arg11: memref<1x8x32xbf16, #tpu.memory_space<vmem>>, %arg12: memref<8x32xf32, #tpu.memory_space<vmem>>) attributes {dimension_semantics = [#tpu.dimension_semantics<parallel>, #tpu.dimension_semantics<arbitrary>], iteration_bounds = array<i64: 2, 4>, scalar_prefetch = 0 : i64, scratch_operands = 1 : i64, tpu.core_type = #tpu.core_type<tc>, window_params = [{transform_indices = @transform_0, window_bounds = array<i64: 1, 1, 8, 8>}, {transform_indices = @transform_1, window_bounds = array<i64: 1, 1, 8, 8>}, {transform_indices = @transform_2, window_bounds = array<i64: 1, 1, 8, 8>}, {transform_indices = @transform_3, window_bounds = array<i64: 1, 1, 8>}, {transform_indices = @transform_4, window_bounds = array<i64: 8, 32>}, {pipeline_mode = #tpu.pipeline_mode<synchronous>, transform_indices = @transform_5, window_bounds = array<i64: 1, 32>}, {transform_indices = @transform_6, window_bounds = array<i64: 1, 8, 32>}, {pipeline_mode = #tpu.pipeline_mode<synchronous>, transform_indices = @transform_7, window_bounds = array<i64: 1, 32>}, {pipeline_mode = #tpu.pipeline_mode<synchronous>, transform_indices = @transform_8, window_bounds = array<i64: 1, 32>}, {transform_indices = @transform_9, window_bounds = array<i64: 1, 8, 32>}]} {
    %c0_i32 = arith.constant 0 : i32
    %0 = arith.cmpi eq, %arg1, %c0_i32 : i32
    %1 = arith.extui %0 : i1 to i32
    %c0_i32_0 = arith.constant 0 : i32
    %2 = arith.cmpi ne, %1, %c0_i32_0 : i32
    scf.if %2 {
      %cst_27 = arith.constant 0.000000e+00 : f32
      %39 = vector.broadcast %cst_27 : f32 to vector<8x32xf32>
      %c0_28 = arith.constant 0 : index
      %c0_29 = arith.constant 0 : index
      %40 = vector.load %arg12[%c0_28, %c0_29] : memref<8x32xf32, #tpu.memory_space<vmem>>, vector<8x32xf32>
      tpu.vector_store %arg12[%c0_28, %c0_29], %39 {strides = array<i32>} : memref<8x32xf32, #tpu.memory_space<vmem>>, vector<8x32xf32>,
    } else {
    }
    %c0 = arith.constant 0 : index
    %c0_1 = arith.constant 0 : index
    %c0_2 = arith.constant 0 : index
    %c0_3 = arith.constant 0 : index
    %3 = vector.load %arg2[%c0, %c0_1, %c0_2, %c0_3] : memref<1x1x8x8xbf16, #tpu.memory_space<vmem>>, vector<1x1x8x8xbf16>
    %4 = vector.shape_cast %3 : vector<1x1x8x8xbf16> to vector<8x8xbf16>
    %c0_4 = arith.constant 0 : index
    %c0_5 = arith.constant 0 : index
    %c0_6 = arith.constant 0 : index
    %c0_7 = arith.constant 0 : index
    %5 = vector.load %arg3[%c0_4, %c0_5, %c0_6, %c0_7] : memref<1x1x8x8xbf16, #tpu.memory_space<vmem>>, vector<1x1x8x8xbf16>
    %6 = vector.shape_cast %5 : vector<1x1x8x8xbf16> to vector<8x8xbf16>
    %c0_8 = arith.constant 0 : index
    %c0_9 = arith.constant 0 : index
    %c0_10 = arith.constant 0 : index
    %c0_11 = arith.constant 0 : index
    %7 = vector.load %arg4[%c0_8, %c0_9, %c0_10, %c0_11] : memref<1x1x8x8xbf16, #tpu.memory_space<vmem>>, vector<1x1x8x8xbf16>
    %8 = vector.shape_cast %7 : vector<1x1x8x8xbf16> to vector<8x8xbf16>
    %9 = arith.extf %4 : vector<8x8xbf16> to vector<8x8xf32>
    %cst = arith.constant 0.353553385 : f32
    %10 = vector.broadcast %cst : f32 to vector<8x8xf32>
    %11 = arith.mulf %9, %10 : vector<8x8xf32>
    %12 = arith.truncf %11 : vector<8x8xf32> to vector<8x8xbf16>
    %cst_12 = arith.constant dense<0.000000e+00> : vector<8x8xf32>
    %13 = tpu.matmul %12, %6, %cst_12 {dimension_numbers = #tpu.dot_dimension_numbers<[1], [1], [0], [0], [0, 0, 1, 0], [], []>} : vector<8x8xbf16>, vector<8x8xbf16>, vector<8x8xf32> -> vector<8x8xf32>
    %c0_13 = arith.constant 0 : index
    %c0_14 = arith.constant 0 : index
    %c0_15 = arith.constant 0 : index
    %14 = vector.load %arg5[%c0_13, %c0_14, %c0_15] : memref<1x1x8xf32, #tpu.memory_space<vmem>>, vector<1x1x8xf32>
    %15 = vector.shape_cast %14 : vector<1x1x8xf32> to vector<1x8xf32>
    %16 = vector.broadcast %15 : vector<1x8xf32> to vector<8x8xf32>
    %17 = arith.addf %13, %16 : vector<8x8xf32>
    %cst_16 = arith.constant dense<0xFF800000> : vector<8xf32>
    %18 = vector.multi_reduction <maximumf>, %17, %cst_16 [1] : vector<8x8xf32> to vector<8xf32>
    %19 = vector.shape_cast %18 : vector<8xf32> to vector<8x1xf32>
    %20 = vector.broadcast %19 : vector<8x1xf32> to vector<8x8xf32>
    %21 = arith.subf %17, %20 : vector<8x8xf32>
    %22 = math.exp %21 : vector<8x8xf32>
    %cst_17 = arith.constant dense<0.000000e+00> : vector<8xf32>
    %23 = vector.multi_reduction <add>, %22, %cst_17 [1] : vector<8x8xf32> to vector<8xf32>
    %24 = vector.shape_cast %23 : vector<8xf32> to vector<8x1xf32>
    %25 = tpu.reciprocal %24 {approx = true} : vector<8x1xf32> -> vector<8x1xf32>
    %26 = vector.broadcast %25 : vector<8x1xf32> to vector<8x8xf32>
    %27 = arith.mulf %22, %26 : vector<8x8xf32>
    %28 = arith.truncf %27 : vector<8x8xf32> to vector<8x8xbf16>
    %cst_18 = arith.constant dense<0.000000e+00> : vector<8x8xf32>
    %29 = tpu.matmul %28, %8, %cst_18 {dimension_numbers = #tpu.dot_dimension_numbers<[1], [0], [0], [1], [0, 0, 1, 1], [], []>} : vector<8x8xbf16>, vector<8x8xbf16>, vector<8x8xf32> -> vector<8x8xf32>
    %c0_19 = arith.constant 0 : index
    %c0_20 = arith.constant 0 : index
    %30 = vector.load %arg12[%c0_19, %c0_20] : memref<8x32xf32, #tpu.memory_space<vmem>>, vector<8x32xf32>
    %31 = arith.truncf %29 : vector<8x8xf32> to vector<8x8xbf16>
    %c0_21 = arith.constant 0 : index
    %c0_22 = arith.constant 0 : index
    %32 = vector.load %arg6[%c0_21, %c0_22] : memref<8x32xbf16, #tpu.memory_space<vmem>>, vector<8x32xbf16>
    %cst_23 = arith.constant dense<0.000000e+00> : vector<8x32xf32>
    %33 = tpu.matmul %31, %32, %cst_23 {dimension_numbers = #tpu.dot_dimension_numbers<[1], [0], [0], [1], [0, 0, 1, 1], [], []>} : vector<8x8xbf16>, vector<8x32xbf16>, vector<8x32xf32> -> vector<8x32xf32>
    %34 = arith.addf %30, %33 : vector<8x32xf32>
    %c0_24 = arith.constant 0 : index
    %c0_25 = arith.constant 0 : index
    %35 = vector.load %arg12[%c0_24, %c0_25] : memref<8x32xf32, #tpu.memory_space<vmem>>, vector<8x32xf32>
    tpu.vector_store %arg12[%c0_24, %c0_25], %34 {strides = array<i32>} : memref<8x32xf32, #tpu.memory_space<vmem>>, vector<8x32xf32>,
    %c3_i32 = arith.constant 3 : i32
    %36 = arith.cmpi eq, %arg1, %c3_i32 : i32
    %37 = arith.extui %36 : i1 to i32
    %c0_i32_26 = arith.constant 0 : i32
    %38 = arith.cmpi ne, %37, %c0_i32_26 : i32
    scf.if %38 {
      %c0_27 = arith.constant 0 : index
      %c0_28 = arith.constant 0 : index
      %39 = vector.load %arg12[%c0_27, %c0_28] : memref<8x32xf32, #tpu.memory_space<vmem>>, vector<8x32xf32>
      %c0_29 = arith.constant 0 : index
      %c0_30 = arith.constant 0 : index
      %40 = vector.load %arg7[%c0_29, %c0_30] : memref<1x32xf32, #tpu.memory_space<vmem>>, vector<1x32xf32>
      %41 = vector.broadcast %40 : vector<1x32xf32> to vector<8x32xf32>
      %42 = arith.addf %39, %41 : vector<8x32xf32>
      %c0_31 = arith.constant 0 : index
      %c0_32 = arith.constant 0 : index
      %c0_33 = arith.constant 0 : index
      %43 = vector.load %arg8[%c0_31, %c0_32, %c0_33] : memref<1x8x32xbf16, #tpu.memory_space<vmem>>, vector<1x8x32xbf16>
      %44 = vector.shape_cast %43 : vector<1x8x32xbf16> to vector<8x32xbf16>
      %45 = arith.extf %44 : vector<8x32xbf16> to vector<8x32xf32>
      %46 = arith.addf %42, %45 : vector<8x32xf32>
      %cst_34 = arith.constant dense<0.000000e+00> : vector<8xf32>
      %47 = vector.multi_reduction <add>, %46, %cst_34 [1] : vector<8x32xf32> to vector<8xf32>
      %48 = vector.shape_cast %47 : vector<8xf32> to vector<8x1xf32>
      %cst_35 = arith.constant 3.200000e+01 : f32
      %49 = vector.broadcast %cst_35 : f32 to vector<8x1xf32>
      %50 = arith.divf %48, %49 : vector<8x1xf32>
      %51 = vector.broadcast %50 : vector<8x1xf32> to vector<8x32xf32>
      %52 = arith.subf %46, %51 : vector<8x32xf32>
      %53 = arith.mulf %52, %52 : vector<8x32xf32>
      %cst_36 = arith.constant dense<0.000000e+00> : vector<8xf32>
      %54 = vector.multi_reduction <add>, %53, %cst_36 [1] : vector<8x32xf32> to vector<8xf32>
      %55 = vector.shape_cast %54 : vector<8xf32> to vector<8x1xf32>
      %cst_37 = arith.constant 3.200000e+01 : f32
      %56 = vector.broadcast %cst_37 : f32 to vector<8x1xf32>
      %57 = arith.divf %55, %56 : vector<8x1xf32>
      %cst_38 = arith.constant 9.99999996E-13 : f32
      %58 = vector.broadcast %cst_38 : f32 to vector<8x1xf32>
      %59 = arith.addf %57, %58 : vector<8x1xf32>
      %60 = math.rsqrt %59 : vector<8x1xf32>
      %61 = vector.broadcast %60 : vector<8x1xf32> to vector<8x32xf32>
      %62 = arith.mulf %52, %61 : vector<8x32xf32>
      %c0_39 = arith.constant 0 : index
      %c0_40 = arith.constant 0 : index
      %63 = vector.load %arg9[%c0_39, %c0_40] : memref<1x32xf32, #tpu.memory_space<vmem>>, vector<1x32xf32>
      %64 = vector.broadcast %63 : vector<1x32xf32> to vector<8x32xf32>
      %65 = arith.mulf %62, %64 : vector<8x32xf32>
      %c0_41 = arith.constant 0 : index
      %c0_42 = arith.constant 0 : index
      %66 = vector.load %arg10[%c0_41, %c0_42] : memref<1x32xf32, #tpu.memory_space<vmem>>, vector<1x32xf32>
      %67 = vector.broadcast %66 : vector<1x32xf32> to vector<8x32xf32>
      %68 = arith.addf %65, %67 : vector<8x32xf32>
      %69 = arith.truncf %68 : vector<8x32xf32> to vector<8x32xbf16>
      %c0_43 = arith.constant 0 : index
      %c0_44 = arith.constant 0 : index
      %c0_45 = arith.constant 0 : index
      %70 = vector.load %arg11[%c0_43, %c0_44, %c0_45] : memref<1x8x32xbf16, #tpu.memory_space<vmem>>, vector<1x8x32xbf16>
      %71 = vector.shape_cast %70 : vector<1x8x32xbf16> to vector<8x32xbf16>
      %72 = vector.shape_cast %69 : vector<8x32xbf16> to vector<1x8x32xbf16>
      tpu.vector_store %arg11[%c0_43, %c0_44, %c0_45], %72 {strides = array<i32>} : memref<1x8x32xbf16, #tpu.memory_space<vmem>>, vector<1x8x32xbf16>,
    } else {
    }
    return
  }
  func.func @transform_0(%arg0: i32, %arg1: i32) -> (i32, i32, i32, i32) {
    %c0_i32 = arith.constant 0 : i32
    %c0_i32_0 = arith.constant 0 : i32
    %c0_i32_1 = arith.constant 0 : i32
    return %arg0, %arg1, %c0_i32, %c0_i32_0 : i32, i32, i32, i32
  }
  func.func @transform_1(%arg0: i32, %arg1: i32) -> (i32, i32, i32, i32) {
    %c0_i32 = arith.constant 0 : i32
    %c0_i32_0 = arith.constant 0 : i32
    %c0_i32_1 = arith.constant 0 : i32
    return %arg0, %arg1, %c0_i32, %c0_i32_0 : i32, i32, i32, i32
  }
  func.func @transform_2(%arg0: i32, %arg1: i32) -> (i32, i32, i32, i32) {
    %c0_i32 = arith.constant 0 : i32
    %c0_i32_0 = arith.constant 0 : i32
    %c0_i32_1 = arith.constant 0 : i32
    return %arg0, %arg1, %c0_i32, %c0_i32_0 : i32, i32, i32, i32
  }
  func.func @transform_3(%arg0: i32, %arg1: i32) -> (i32, i32, i32) {
    %c0_i32 = arith.constant 0 : i32
    %c0_i32_0 = arith.constant 0 : i32
    %c0_i32_1 = arith.constant 0 : i32
    return %arg0, %c0_i32, %c0_i32_0 : i32, i32, i32
  }
  func.func @transform_4(%arg0: i32, %arg1: i32) -> (i32, i32) {
    %c0_i32 = arith.constant 0 : i32
    %c0_i32_0 = arith.constant 0 : i32
    return %arg1, %c0_i32 : i32, i32
  }
  func.func @transform_5(%arg0: i32, %arg1: i32) -> (i32, i32) {
    %c0_i32 = arith.constant 0 : i32
    %c0_i32_0 = arith.constant 0 : i32
    %c0_i32_1 = arith.constant 0 : i32
    return %c0_i32, %c0_i32_0 : i32, i32
  }
  func.func @transform_6(%arg0: i32, %arg1: i32) -> (i32, i32, i32) {
    %c0_i32 = arith.constant 0 : i32
    %c0_i32_0 = arith.constant 0 : i32
    %c0_i32_1 = arith.constant 0 : i32
    return %arg0, %c0_i32, %c0_i32_0 : i32, i32, i32
  }
  func.func @transform_7(%arg0: i32, %arg1: i32) -> (i32, i32) {
    %c0_i32 = arith.constant 0 : i32
    %c0_i32_0 = arith.constant 0 : i32
    %c0_i32_1 = arith.constant 0 : i32
    return %c0_i32, %c0_i32_0 : i32, i32
  }
  func.func @transform_8(%arg0: i32, %arg1: i32) -> (i32, i32) {
    %c0_i32 = arith.constant 0 : i32
    %c0_i32_0 = arith.constant 0 : i32
    %c0_i32_1 = arith.constant 0 : i32
    return %c0_i32, %c0_i32_0 : i32, i32
  }
  func.func @transform_9(%arg0: i32, %arg1: i32) -> (i32, i32, i32) {
    %c0_i32 = arith.constant 0 : i32
    %c0_i32_0 = arith.constant 0 : i32
    %c0_i32_1 = arith.constant 0 : i32
    return %arg0, %c0_i32, %c0_i32_0 : i32, i32, i32
  }
}

module attributes {stable_mosaic.version = 11 : i64} {
  func.func @_dense_kernel(%arg0: i32, %arg1: i32, %arg2: i32, %arg3: memref<16x32xbf16, #tpu.memory_space<vmem>>, %arg4: memref<32x64xbf16, #tpu.memory_space<vmem>>, %arg5: memref<1x64xf32, #tpu.memory_space<vmem>>, %arg6: memref<16x64xbf16, #tpu.memory_space<vmem>>, %arg7: memref<16x64xf32, #tpu.memory_space<vmem>>) attributes {dimension_semantics = [#tpu.dimension_semantics<parallel>, #tpu.dimension_semantics<parallel>, #tpu.dimension_semantics<arbitrary>], iteration_bounds = array<i64: 1, 1, 1>, scalar_prefetch = 0 : i64, scratch_operands = 1 : i64, tpu.core_type = #tpu.core_type<tc>, window_params = [{transform_indices = @transform_0, window_bounds = array<i64: 16, 32>}, {transform_indices = @transform_1, window_bounds = array<i64: 32, 64>}, {transform_indices = @transform_2, window_bounds = array<i64: 1, 64>}, {transform_indices = @transform_3, window_bounds = array<i64: 16, 64>}]} {
    %c0_i32 = arith.constant 0 : i32
    %0 = arith.cmpi eq, %arg2, %c0_i32 : i32
    %1 = arith.extui %0 : i1 to i32
    %c0_i32_0 = arith.constant 0 : i32
    %2 = arith.cmpi ne, %1, %c0_i32_0 : i32
    scf.if %2 {
      %cst_10 = arith.constant 0.000000e+00 : f32
      %12 = vector.broadcast %cst_10 : f32 to vector<16x64xf32>
      %c0_11 = arith.constant 0 : index
      %c0_12 = arith.constant 0 : index
      %13 = vector.load %arg7[%c0_11, %c0_12] : memref<16x64xf32, #tpu.memory_space<vmem>>, vector<16x64xf32>
      tpu.vector_store %arg7[%c0_11, %c0_12], %12 {strides = array<i32>} : memref<16x64xf32, #tpu.memory_space<vmem>>, vector<16x64xf32>,
    } else {
    }
    %c0 = arith.constant 0 : index
    %c0_1 = arith.constant 0 : index
    %3 = vector.load %arg7[%c0, %c0_1] : memref<16x64xf32, #tpu.memory_space<vmem>>, vector<16x64xf32>
    %c0_2 = arith.constant 0 : index
    %c0_3 = arith.constant 0 : index
    %4 = vector.load %arg3[%c0_2, %c0_3] : memref<16x32xbf16, #tpu.memory_space<vmem>>, vector<16x32xbf16>
    %c0_4 = arith.constant 0 : index
    %c0_5 = arith.constant 0 : index
    %5 = vector.load %arg4[%c0_4, %c0_5] : memref<32x64xbf16, #tpu.memory_space<vmem>>, vector<32x64xbf16>
    %cst = arith.constant dense<0.000000e+00> : vector<16x64xf32>
    %6 = tpu.matmul %4, %5, %cst {dimension_numbers = #tpu.dot_dimension_numbers<[1], [0], [0], [1], [0, 0, 1, 1], [], []>} : vector<16x32xbf16>, vector<32x64xbf16>, vector<16x64xf32> -> vector<16x64xf32>
    %7 = arith.addf %3, %6 : vector<16x64xf32>
    %c0_6 = arith.constant 0 : index
    %c0_7 = arith.constant 0 : index
    %8 = vector.load %arg7[%c0_6, %c0_7] : memref<16x64xf32, #tpu.memory_space<vmem>>, vector<16x64xf32>
    tpu.vector_store %arg7[%c0_6, %c0_7], %7 {strides = array<i32>} : memref<16x64xf32, #tpu.memory_space<vmem>>, vector<16x64xf32>,
    %c0_i32_8 = arith.constant 0 : i32
    %9 = arith.cmpi eq, %arg2, %c0_i32_8 : i32
    %10 = arith.extui %9 : i1 to i32
    %c0_i32_9 = arith.constant 0 : i32
    %11 = arith.cmpi ne, %10, %c0_i32_9 : i32
    scf.if %11 {
      %c0_10 = arith.constant 0 : index
      %c0_11 = arith.constant 0 : index
      %12 = vector.load %arg7[%c0_10, %c0_11] : memref<16x64xf32, #tpu.memory_space<vmem>>, vector<16x64xf32>
      %c0_12 = arith.constant 0 : index
      %c0_13 = arith.constant 0 : index
      %13 = vector.load %arg5[%c0_12, %c0_13] : memref<1x64xf32, #tpu.memory_space<vmem>>, vector<1x64xf32>
      %14 = vector.broadcast %13 : vector<1x64xf32> to vector<16x64xf32>
      %15 = arith.addf %12, %14 : vector<16x64xf32>
      %16 = arith.mulf %15, %15 : vector<16x64xf32>
      %17 = arith.mulf %15, %16 : vector<16x64xf32>
      %cst_14 = arith.constant 4.471500e-02 : f32
      %18 = vector.broadcast %cst_14 : f32 to vector<16x64xf32>
      %19 = arith.mulf %18, %17 : vector<16x64xf32>
      %20 = arith.addf %15, %19 : vector<16x64xf32>
      %cst_15 = arith.constant 0.797884583 : f32
      %21 = vector.broadcast %cst_15 : f32 to vector<16x64xf32>
      %22 = arith.mulf %21, %20 : vector<16x64xf32>
      %23 = math.tanh %22 : vector<16x64xf32>
      %cst_16 = arith.constant 1.000000e+00 : f32
      %24 = vector.broadcast %cst_16 : f32 to vector<16x64xf32>
      %25 = arith.addf %24, %23 : vector<16x64xf32>
      %cst_17 = arith.constant 5.000000e-01 : f32
      %26 = vector.broadcast %cst_17 : f32 to vector<16x64xf32>
      %27 = arith.mulf %26, %25 : vector<16x64xf32>
      %28 = arith.mulf %15, %27 : vector<16x64xf32>
      %29 = arith.truncf %28 : vector<16x64xf32> to vector<16x64xbf16>
      %c0_18 = arith.constant 0 : index
      %c0_19 = arith.constant 0 : index
      %30 = vector.load %arg6[%c0_18, %c0_19] : memref<16x64xbf16, #tpu.memory_space<vmem>>, vector<16x64xbf16>
      tpu.vector_store %arg6[%c0_18, %c0_19], %29 {strides = array<i32>} : memref<16x64xbf16, #tpu.memory_space<vmem>>, vector<16x64xbf16>,
    } else {
    }
    return
  }
  func.func @transform_0(%arg0: i32, %arg1: i32, %arg2: i32) -> (i32, i32) {
    %c0_i32 = arith.constant 0 : i32
    return %arg0, %arg2 : i32, i32
  }
  func.func @transform_1(%arg0: i32, %arg1: i32, %arg2: i32) -> (i32, i32) {
    %c0_i32 = arith.constant 0 : i32
    return %arg2, %arg1 : i32, i32
  }
  func.func @transform_2(%arg0: i32, %arg1: i32, %arg2: i32) -> (i32, i32) {
    %c0_i32 = arith.constant 0 : i32
    %c0_i32_0 = arith.constant 0 : i32
    return %c0_i32, %arg1 : i32, i32
  }
  func.func @transform_3(%arg0: i32, %arg1: i32, %arg2: i32) -> (i32, i32) {
    %c0_i32 = arith.constant 0 : i32
    return %arg0, %arg1 : i32, i32
  }
}

module attributes {stable_mosaic.version = 11 : i64} {
  func.func @_dense_addln_kernel(%arg0: i32, %arg1: i32, %arg2: memref<16x64xbf16, #tpu.memory_space<vmem>>, %arg3: memref<64x32xbf16, #tpu.memory_space<vmem>>, %arg4: memref<1x32xf32, #tpu.memory_space<vmem>>, %arg5: memref<16x32xbf16, #tpu.memory_space<vmem>>, %arg6: memref<1x32xf32, #tpu.memory_space<vmem>>, %arg7: memref<1x32xf32, #tpu.memory_space<vmem>>, %arg8: memref<16x32xbf16, #tpu.memory_space<vmem>>, %arg9: memref<16x32xf32, #tpu.memory_space<vmem>>) attributes {dimension_semantics = [#tpu.dimension_semantics<parallel>, #tpu.dimension_semantics<arbitrary>], iteration_bounds = array<i64: 1, 1>, scalar_prefetch = 0 : i64, scratch_operands = 1 : i64, tpu.core_type = #tpu.core_type<tc>, window_params = [{transform_indices = @transform_0, window_bounds = array<i64: 16, 64>}, {transform_indices = @transform_1, window_bounds = array<i64: 64, 32>}, {pipeline_mode = #tpu.pipeline_mode<synchronous>, transform_indices = @transform_2, window_bounds = array<i64: 1, 32>}, {transform_indices = @transform_3, window_bounds = array<i64: 16, 32>}, {pipeline_mode = #tpu.pipeline_mode<synchronous>, transform_indices = @transform_4, window_bounds = array<i64: 1, 32>}, {pipeline_mode = #tpu.pipeline_mode<synchronous>, transform_indices = @transform_5, window_bounds = array<i64: 1, 32>}, {transform_indices = @transform_6, window_bounds = array<i64: 16, 32>}]} {
    %c0_i32 = arith.constant 0 : i32
    %0 = arith.cmpi eq, %arg1, %c0_i32 : i32
    %1 = arith.extui %0 : i1 to i32
    %c0_i32_0 = arith.constant 0 : i32
    %2 = arith.cmpi ne, %1, %c0_i32_0 : i32
    scf.if %2 {
      %cst_10 = arith.constant 0.000000e+00 : f32
      %12 = vector.broadcast %cst_10 : f32 to vector<16x32xf32>
      %c0_11 = arith.constant 0 : index
      %c0_12 = arith.constant 0 : index
      %13 = vector.load %arg9[%c0_11, %c0_12] : memref<16x32xf32, #tpu.memory_space<vmem>>, vector<16x32xf32>
      tpu.vector_store %arg9[%c0_11, %c0_12], %12 {strides = array<i32>} : memref<16x32xf32, #tpu.memory_space<vmem>>, vector<16x32xf32>,
    } else {
    }
    %c0 = arith.constant 0 : index
    %c0_1 = arith.constant 0 : index
    %3 = vector.load %arg9[%c0, %c0_1] : memref<16x32xf32, #tpu.memory_space<vmem>>, vector<16x32xf32>
    %c0_2 = arith.constant 0 : index
    %c0_3 = arith.constant 0 : index
    %4 = vector.load %arg2[%c0_2, %c0_3] : memref<16x64xbf16, #tpu.memory_space<vmem>>, vector<16x64xbf16>
    %c0_4 = arith.constant 0 : index
    %c0_5 = arith.constant 0 : index
    %5 = vector.load %arg3[%c0_4, %c0_5] : memref<64x32xbf16, #tpu.memory_space<vmem>>, vector<64x32xbf16>
    %cst = arith.constant dense<0.000000e+00> : vector<16x32xf32>
    %6 = tpu.matmul %4, %5, %cst {dimension_numbers = #tpu.dot_dimension_numbers<[1], [0], [0], [1], [0, 0, 1, 1], [], []>} : vector<16x64xbf16>, vector<64x32xbf16>, vector<16x32xf32> -> vector<16x32xf32>
    %7 = arith.addf %3, %6 : vector<16x32xf32>
    %c0_6 = arith.constant 0 : index
    %c0_7 = arith.constant 0 : index
    %8 = vector.load %arg9[%c0_6, %c0_7] : memref<16x32xf32, #tpu.memory_space<vmem>>, vector<16x32xf32>
    tpu.vector_store %arg9[%c0_6, %c0_7], %7 {strides = array<i32>} : memref<16x32xf32, #tpu.memory_space<vmem>>, vector<16x32xf32>,
    %c0_i32_8 = arith.constant 0 : i32
    %9 = arith.cmpi eq, %arg1, %c0_i32_8 : i32
    %10 = arith.extui %9 : i1 to i32
    %c0_i32_9 = arith.constant 0 : i32
    %11 = arith.cmpi ne, %10, %c0_i32_9 : i32
    scf.if %11 {
      %c0_10 = arith.constant 0 : index
      %c0_11 = arith.constant 0 : index
      %12 = vector.load %arg9[%c0_10, %c0_11] : memref<16x32xf32, #tpu.memory_space<vmem>>, vector<16x32xf32>
      %c0_12 = arith.constant 0 : index
      %c0_13 = arith.constant 0 : index
      %13 = vector.load %arg4[%c0_12, %c0_13] : memref<1x32xf32, #tpu.memory_space<vmem>>, vector<1x32xf32>
      %14 = vector.broadcast %13 : vector<1x32xf32> to vector<16x32xf32>
      %15 = arith.addf %12, %14 : vector<16x32xf32>
      %c0_14 = arith.constant 0 : index
      %c0_15 = arith.constant 0 : index
      %16 = vector.load %arg5[%c0_14, %c0_15] : memref<16x32xbf16, #tpu.memory_space<vmem>>, vector<16x32xbf16>
      %17 = arith.extf %16 : vector<16x32xbf16> to vector<16x32xf32>
      %18 = arith.addf %15, %17 : vector<16x32xf32>
      %cst_16 = arith.constant dense<0.000000e+00> : vector<16xf32>
      %19 = vector.multi_reduction <add>, %18, %cst_16 [1] : vector<16x32xf32> to vector<16xf32>
      %20 = vector.shape_cast %19 : vector<16xf32> to vector<16x1xf32>
      %cst_17 = arith.constant 3.200000e+01 : f32
      %21 = vector.broadcast %cst_17 : f32 to vector<16x1xf32>
      %22 = arith.divf %20, %21 : vector<16x1xf32>
      %23 = vector.broadcast %22 : vector<16x1xf32> to vector<16x32xf32>
      %24 = arith.subf %18, %23 : vector<16x32xf32>
      %25 = arith.mulf %24, %24 : vector<16x32xf32>
      %cst_18 = arith.constant dense<0.000000e+00> : vector<16xf32>
      %26 = vector.multi_reduction <add>, %25, %cst_18 [1] : vector<16x32xf32> to vector<16xf32>
      %27 = vector.shape_cast %26 : vector<16xf32> to vector<16x1xf32>
      %cst_19 = arith.constant 3.200000e+01 : f32
      %28 = vector.broadcast %cst_19 : f32 to vector<16x1xf32>
      %29 = arith.divf %27, %28 : vector<16x1xf32>
      %cst_20 = arith.constant 9.99999996E-13 : f32
      %30 = vector.broadcast %cst_20 : f32 to vector<16x1xf32>
      %31 = arith.addf %29, %30 : vector<16x1xf32>
      %32 = math.rsqrt %31 : vector<16x1xf32>
      %33 = vector.broadcast %32 : vector<16x1xf32> to vector<16x32xf32>
      %34 = arith.mulf %24, %33 : vector<16x32xf32>
      %c0_21 = arith.constant 0 : index
      %c0_22 = arith.constant 0 : index
      %35 = vector.load %arg6[%c0_21, %c0_22] : memref<1x32xf32, #tpu.memory_space<vmem>>, vector<1x32xf32>
      %36 = vector.broadcast %35 : vector<1x32xf32> to vector<16x32xf32>
      %37 = arith.mulf %34, %36 : vector<16x32xf32>
      %c0_23 = arith.constant 0 : index
      %c0_24 = arith.constant 0 : index
      %38 = vector.load %arg7[%c0_23, %c0_24] : memref<1x32xf32, #tpu.memory_space<vmem>>, vector<1x32xf32>
      %39 = vector.broadcast %38 : vector<1x32xf32> to vector<16x32xf32>
      %40 = arith.addf %37, %39 : vector<16x32xf32>
      %41 = arith.truncf %40 : vector<16x32xf32> to vector<16x32xbf16>
      %c0_25 = arith.constant 0 : index
      %c0_26 = arith.constant 0 : index
      %42 = vector.load %arg8[%c0_25, %c0_26] : memref<16x32xbf16, #tpu.memory_space<vmem>>, vector<16x32xbf16>
      tpu.vector_store %arg8[%c0_25, %c0_26], %41 {strides = array<i32>} : memref<16x32xbf16, #tpu.memory_space<vmem>>, vector<16x32xbf16>,
    } else {
    }
    return
  }
  func.func @transform_0(%arg0: i32, %arg1: i32) -> (i32, i32) {
    %c0_i32 = arith.constant 0 : i32
    return %arg0, %arg1 : i32, i32
  }
  func.func @transform_1(%arg0: i32, %arg1: i32) -> (i32, i32) {
    %c0_i32 = arith.constant 0 : i32
    %c0_i32_0 = arith.constant 0 : i32
    return %arg1, %c0_i32 : i32, i32
  }
  func.func @transform_2(%arg0: i32, %arg1: i32) -> (i32, i32) {
    %c0_i32 = arith.constant 0 : i32
    %c0_i32_0 = arith.constant 0 : i32
    %c0_i32_1 = arith.constant 0 : i32
    return %c0_i32, %c0_i32_0 : i32, i32
  }
  func.func @transform_3(%arg0: i32, %arg1: i32) -> (i32, i32) {
    %c0_i32 = arith.constant 0 : i32
    %c0_i32_0 = arith.constant 0 : i32
    return %arg0, %c0_i32 : i32, i32
  }
  func.func @transform_4(%arg0: i32, %arg1: i32) -> (i32, i32) {
    %c0_i32 = arith.constant 0 : i32
    %c0_i32_0 = arith.constant 0 : i32
    %c0_i32_1 = arith.constant 0 : i32
    return %c0_i32, %c0_i32_0 : i32, i32
  }
  func.func @transform_5(%arg0: i32, %arg1: i32) -> (i32, i32) {
    %c0_i32 = arith.constant 0 : i32
    %c0_i32_0 = arith.constant 0 : i32
    %c0_i32_1 = arith.constant 0 : i32
    return %c0_i32, %c0_i32_0 : i32, i32
  }
  func.func @transform_6(%arg0: i32, %arg1: i32) -> (i32, i32) {
    %c0_i32 = arith.constant 0 : i32
    %c0_i32_0 = arith.constant 0 : i32
    return %arg0, %c0_i32 : i32, i32
  }
}

module attributes {stable_mosaic.version = 11 : i64} {
  func.func @_head_kernel(%arg0: i32, %arg1: memref<1x32x32xbf16, #tpu.memory_space<vmem>>, %arg2: memref<1x32x32xbf16, #tpu.memory_space<vmem>>, %arg3: memref<32x256xbf16, #tpu.memory_space<vmem>>, %arg4: memref<1x256xf32, #tpu.memory_space<vmem>>, %arg5: memref<256x1xbf16, #tpu.memory_space<vmem>>, %arg6: memref<1x1xf32, #tpu.memory_space<vmem>>, %arg7: memref<1x1x1xf32, #tpu.memory_space<vmem>>) attributes {dimension_semantics = [#tpu.dimension_semantics<parallel>], iteration_bounds = array<i64: 2>, scalar_prefetch = 0 : i64, scratch_operands = 0 : i64, tpu.core_type = #tpu.core_type<tc>, window_params = [{transform_indices = @transform_0, window_bounds = array<i64: 1, 32, 32>}, {transform_indices = @transform_1, window_bounds = array<i64: 1, 32, 32>}, {pipeline_mode = #tpu.pipeline_mode<synchronous>, transform_indices = @transform_2, window_bounds = array<i64: 32, 256>}, {pipeline_mode = #tpu.pipeline_mode<synchronous>, transform_indices = @transform_3, window_bounds = array<i64: 1, 256>}, {pipeline_mode = #tpu.pipeline_mode<synchronous>, transform_indices = @transform_4, window_bounds = array<i64: 256, 1>}, {pipeline_mode = #tpu.pipeline_mode<synchronous>, transform_indices = @transform_5, window_bounds = array<i64: 1, 1>}, {transform_indices = @transform_6, window_bounds = array<i64: 1, 1, 1>}]} {
    %c0 = arith.constant 0 : index
    %c0_0 = arith.constant 0 : index
    %c0_1 = arith.constant 0 : index
    %0 = vector.load %arg1[%c0, %c0_0, %c0_1] : memref<1x32x32xbf16, #tpu.memory_space<vmem>>, vector<1x32x32xbf16>
    %1 = vector.shape_cast %0 : vector<1x32x32xbf16> to vector<32x32xbf16>
    %2 = arith.extf %1 : vector<32x32xbf16> to vector<32x32xf32>
    %c0_2 = arith.constant 0 : index
    %c0_3 = arith.constant 0 : index
    %c0_4 = arith.constant 0 : index
    %3 = vector.load %arg2[%c0_2, %c0_3, %c0_4] : memref<1x32x32xbf16, #tpu.memory_space<vmem>>, vector<1x32x32xbf16>
    %4 = vector.shape_cast %3 : vector<1x32x32xbf16> to vector<32x32xbf16>
    %5 = arith.extf %4 : vector<32x32xbf16> to vector<32x32xf32>
    %6 = arith.mulf %2, %5 : vector<32x32xf32>
    %cst = arith.constant dense<0.000000e+00> : vector<32xf32>
    %7 = vector.multi_reduction <add>, %6, %cst [0] : vector<32x32xf32> to vector<32xf32>
    %8 = vector.shape_cast %7 : vector<32xf32> to vector<1x32xf32>
    %9 = arith.mulf %2, %2 : vector<32x32xf32>
    %cst_5 = arith.constant dense<0.000000e+00> : vector<32xf32>
    %10 = vector.multi_reduction <add>, %9, %cst_5 [0] : vector<32x32xf32> to vector<32xf32>
    %11 = vector.shape_cast %10 : vector<32xf32> to vector<1x32xf32>
    %12 = arith.mulf %5, %5 : vector<32x32xf32>
    %cst_6 = arith.constant dense<0.000000e+00> : vector<32xf32>
    %13 = vector.multi_reduction <add>, %12, %cst_6 [0] : vector<32x32xf32> to vector<32xf32>
    %14 = vector.shape_cast %13 : vector<32xf32> to vector<1x32xf32>
    %15 = arith.mulf %11, %14 : vector<1x32xf32>
    %16 = math.sqrt %15 : vector<1x32xf32>
    %cst_7 = arith.constant 9.99999993E-9 : f32
    %17 = vector.broadcast %cst_7 : f32 to vector<1x32xf32>
    %18 = arith.maximumf %16, %17 : vector<1x32xf32>
    %19 = tpu.reciprocal %18 {approx = true} : vector<1x32xf32> -> vector<1x32xf32>
    %20 = arith.mulf %8, %19 : vector<1x32xf32>
    %21 = arith.truncf %20 : vector<1x32xf32> to vector<1x32xbf16>
    %c0_8 = arith.constant 0 : index
    %c0_9 = arith.constant 0 : index
    %22 = vector.load %arg3[%c0_8, %c0_9] : memref<32x256xbf16, #tpu.memory_space<vmem>>, vector<32x256xbf16>
    %cst_10 = arith.constant dense<0.000000e+00> : vector<1x256xf32>
    %23 = tpu.matmul %21, %22, %cst_10 {dimension_numbers = #tpu.dot_dimension_numbers<[1], [0], [0], [1], [0, 0, 1, 1], [], []>} : vector<1x32xbf16>, vector<32x256xbf16>, vector<1x256xf32> -> vector<1x256xf32>
    %c0_11 = arith.constant 0 : index
    %c0_12 = arith.constant 0 : index
    %24 = vector.load %arg4[%c0_11, %c0_12] : memref<1x256xf32, #tpu.memory_space<vmem>>, vector<1x256xf32>
    %25 = arith.addf %23, %24 : vector<1x256xf32>
    %26 = arith.truncf %25 : vector<1x256xf32> to vector<1x256xbf16>
    %c0_13 = arith.constant 0 : index
    %c0_14 = arith.constant 0 : index
    %27 = vector.load %arg5[%c0_13, %c0_14] : memref<256x1xbf16, #tpu.memory_space<vmem>>, vector<256x1xbf16>
    %cst_15 = arith.constant dense<0.000000e+00> : vector<1x1xf32>
    %28 = tpu.matmul %26, %27, %cst_15 {dimension_numbers = #tpu.dot_dimension_numbers<[1], [0], [0], [1], [0, 0, 1, 1], [], []>} : vector<1x256xbf16>, vector<256x1xbf16>, vector<1x1xf32> -> vector<1x1xf32>
    %c0_16 = arith.constant 0 : index
    %c0_17 = arith.constant 0 : index
    %29 = vector.load %arg6[%c0_16, %c0_17] : memref<1x1xf32, #tpu.memory_space<vmem>>, vector<1x1xf32>
    %30 = arith.addf %28, %29 : vector<1x1xf32>
    %31 = arith.negf %30 : vector<1x1xf32>
    %32 = math.exp %31 : vector<1x1xf32>
    %cst_18 = arith.constant 1.000000e+00 : f32
    %33 = vector.broadcast %cst_18 : f32 to vector<1x1xf32>
    %34 = arith.addf %33, %32 : vector<1x1xf32>
    %35 = arith.divf %33, %34 : vector<1x1xf32>
    %c0_19 = arith.constant 0 : index
    %c0_20 = arith.constant 0 : index
    %c0_21 = arith.constant 0 : index
    %36 = vector.load %arg7[%c0_19, %c0_20, %c0_21] : memref<1x1x1xf32, #tpu.memory_space<vmem>>, vector<1x1x1xf32>
    %37 = vector.shape_cast %36 : vector<1x1x1xf32> to vector<1x1xf32>
    %38 = vector.shape_cast %35 : vector<1x1xf32> to vector<1x1x1xf32>
    tpu.vector_store %arg7[%c0_19, %c0_20, %c0_21], %38 {strides = array<i32>} : memref<1x1x1xf32, #tpu.memory_space<vmem>>, vector<1x1x1xf32>,
    return
  }
  func.func @transform_0(%arg0: i32) -> (i32, i32, i32) {
    %c0_i32 = arith.constant 0 : i32
    %c0_i32_0 = arith.constant 0 : i32
    %c0_i32_1 = arith.constant 0 : i32
    return %arg0, %c0_i32, %c0_i32_0 : i32, i32, i32
  }
  func.func @transform_1(%arg0: i32) -> (i32, i32, i32) {
    %c0_i32 = arith.constant 0 : i32
    %c0_i32_0 = arith.constant 0 : i32
    %c0_i32_1 = arith.constant 0 : i32
    return %arg0, %c0_i32, %c0_i32_0 : i32, i32, i32
  }
  func.func @transform_2(%arg0: i32) -> (i32, i32) {
    %c0_i32 = arith.constant 0 : i32
    %c0_i32_0 = arith.constant 0 : i32
    %c0_i32_1 = arith.constant 0 : i32
    return %c0_i32, %c0_i32_0 : i32, i32
  }
  func.func @transform_3(%arg0: i32) -> (i32, i32) {
    %c0_i32 = arith.constant 0 : i32
    %c0_i32_0 = arith.constant 0 : i32
    %c0_i32_1 = arith.constant 0 : i32
    return %c0_i32, %c0_i32_0 : i32, i32
  }
  func.func @transform_4(%arg0: i32) -> (i32, i32) {
    %c0_i32 = arith.constant 0 : i32
    %c0_i32_0 = arith.constant 0 : i32
    %c0_i32_1 = arith.constant 0 : i32
    return %c0_i32, %c0_i32_0 : i32, i32
  }
  func.func @transform_5(%arg0: i32) -> (i32, i32) {
    %c0_i32 = arith.constant 0 : i32
    %c0_i32_0 = arith.constant 0 : i32
    %c0_i32_1 = arith.constant 0 : i32
    return %c0_i32, %c0_i32_0 : i32, i32
  }
  func.func @transform_6(%arg0: i32) -> (i32, i32, i32) {
    %c0_i32 = arith.constant 0 : i32
    %c0_i32_0 = arith.constant 0 : i32
    %c0_i32_1 = arith.constant 0 : i32
    return %arg0, %c0_i32, %c0_i32_0 : i32, i32, i32
  }
}

</mosaic_0001>

<bundles_post_ra>
// kernel: bert_qa_forward.37
= control target key start
LH: loop header
LB: loop body
LE: loop exit
PB: predicated region body
PF: predicated region fallthrough
CT: control target
= control target key end

     0   :  { %vm19_vm0 = vcmask 785408   ;;  %v151_v0 = vmov 0.0   ;;  %vm152_vm1 = vmmov 0   ;;  %vm47_vm2 = vcmask 261120   ;;  %s195_s1 = inlined_call_operand.vmem [shape: bf16[32,96], index: 1, kind: input, shape index: {}]   ;;  %s196_s0 = inlined_call_operand.vmem [shape: bf16[16,32], index: 0, kind: input, shape index: {}]   ;;  %s197_s2 = inlined_call_operand.vmem [shape: f32[1,96], index: 2, kind: input, shape index: {}]   ;;  %s198_s3 = inlined_call_operand.vmem [shape: bf16[16,96], index: 3, kind: output, shape index: {}]  }
   0x1   :  { %138 = vmatprep.subr.bf16.mxu0 %v151_v0  ;;  %v148_v1 = vld [vmem:[%s195_s1] sm:$0xff]   ;;  %142 = vmatprep.mubr.msk.bf16.mxu0 %vm152_vm1, %v151_v0  ;;  %20 = vst.msk [vmem:[#allocation2] sm:$0xff] %vm19_vm0, %v151_v0  ;;  %21 = vst.msk [vmem:[#allocation2 + $0x8] sm:$0xff] %vm19_vm0, %v151_v0  ;;  %v149_v2 = vld [vmem:[%s195_s1 + $0x8] sm:$0xff]   ;;  %vm119_vm3 = vcmask 781312  }
   0x2   :  { %139 = vmatpush3.bf16.msra.mxu0 %v148_v1  ;;  %v150_v3 = vld [vmem:[%s196_s0] sm:$0xff]  }
   0x3   :  { %140 = vmatprep.subr.bf16.mxu0 %v151_v0  ;;  %v130_v12 = vld [vmem:[%s197_s2] ss:$0 sm:$0xff] }
   0x6   :  { %141 = vmatpush3.bf16.msra.mxu0 %v149_v2 }
   0x8   :  { %v22_v4 = vld [vmem:[#allocation2] sm:$0xff]  ;;  %v23_v6 = vld [vmem:[#allocation2 + $0x8] sm:$0xff] }
   0x9   :  { %143 = vmatmul.mubr.msk.bf16.vlgmr.msra.gmra.mrb[0].mxu0 %vm47_vm2, %v150_v3 }
  0xdc   :  { %v85_v5 = vpop.f32.mrb[0].mxu0 }
  0xdd   :  { %v92_v7 = vadd.f32 %v85_v5, %v22_v4  ;;  %v144_v8 = vpop.f32.mrb[1].mxu0 }
  0xde   :  { %v88_v9 = vpop.f32.mrb[2].mxu0 }
  0xdf   :  { %95 = vst.msk [vmem:[#allocation2] sm:$0xff] %vm19_vm0, %v92_v7  ;;  %v93_v10 = vadd.f32 %v88_v9, %v23_v6  ;;  %v145_v11 = vpop.f32.mrb[3].mxu0 }
  0xe1   :  { %96 = vst.msk [vmem:[#allocation2 + $0x8] sm:$0xff] %vm19_vm0, %v93_v10 }
  0xe6   :  { %v100_v13 = vld [vmem:[#allocation2] sm:$0xff] }
  0xe7   :  { %v109_v14 = vadd.f32 %v130_v12, %v100_v13 }
  0xe8   :  { %v101_v15 = vld [vmem:[#allocation2 + $0x8] sm:$0xff] }
  0xe9   :  { %v133_v16 = vpack.c.bf16 %v109_v14, %v109_v14  ;;  %v110_v17 = vadd.f32 %v130_v12, %v101_v15 }
  0xeb   :  { %120 = vst.msk [vmem:[%s198_s3] sm:$0xf] %vm119_vm3, %v133_v16  ;;  %v134_v18 = vpack.c.bf16 %v110_v17, %v110_v17 }
  0xed   :  { %121 = vst.msk [vmem:[%s198_s3 + $0x4] sm:$0xf] %vm119_vm3, %v134_v18 }

// kernel: bert_qa_forward.38
= control target key start
LH: loop header
LB: loop body
LE: loop exit
PB: predicated region body
PF: predicated region fallthrough
CT: control target
= control target key end

     0   :  { %s1021_s30 = smov 0   ;;  %s1023_s10 = smov 0   ;;  %s1151_s0 = inlined_call_operand.vmem [shape: bf16[2,4,8,8], index: 0, kind: input, shape index: {}]   ;;  %s1152_s1 = inlined_call_operand.vmem [shape: bf16[2,4,8,8], index: 1, kind: input, shape index: {}]   ;;  %s1153_s2 = inlined_call_operand.vmem [shape: bf16[2,4,8,8], index: 2, kind: input, shape index: {}]   ;;  %s1154_s3 = inlined_call_operand.vmem [shape: f32[2,1,8], index: 3, kind: input, shape index: {}]   ;;  %s1155_s4 = inlined_call_operand.vmem [shape: bf16[32,32], index: 4, kind: input, shape index: {}]   ;;  %s1156_s5 = inlined_call_operand.vmem [shape: f32[1,32], index: 5, kind: input, shape index: {}]   ;;  %s1157_s6 = inlined_call_operand.vmem [shape: bf16[2,8,32], index: 6, kind: input, shape index: {}]   ;;  %s1158_s7 = inlined_call_operand.vmem [shape: f32[1,32], index: 7, kind: input, shape index: {}]   ;;  %s1159_s8 = inlined_call_operand.vmem [shape: f32[1,32], index: 8, kind: input, shape index: {}]   ;;  %s1160_s9 = inlined_call_operand.vmem [shape: bf16[2,8,32], index: 9, kind: output, shape index: {}]  }
   0x1   :  { %s1025_s11 = smov 0   ;;  %s1027_s12 = smov 0  }
   0x2   :  { %s1029_s13 = smov 0  }
   0x3 LB: > { %1163 = sst [smem:[#allocation3_spill]] %s958_s11  ;;  %s28_s14 = sadd.s32 1, %s958_s11  ;;  %s966_s13 = sphi %s1029_s13, %s19_s13   ;;  %s962_s12 = sphi %s1027_s12, %s1171_s12   ;;  %s958_s11 = sphi %s1025_s11, %s1170_s11   ;;  %s954_s10 = sphi %s1023_s10, %s1169_s10   ;;  %s950_s30 = sphi %s1021_s30, %s1168_s30  }
   0x4   : > { %1164 = sst [smem:[#allocation4_spill]] %s962_s12  ;;  %s31_s15 = sadd.s32 1, %s962_s12 }
   0x5   : > { %p29_p0 = scmp.ge.s32.totalorder %s28_s14, 4  ;;  %p834_p1 = scmp.ge.s32.totalorder %s966_s13, 1 }
   0x6   : > { %p360_p2 = scmp.lt.s32.totalorder %s966_s13, 9 }
   0x7   : > { %s1173_s14 = smov (%p29_p0, %s28_s14), 0  ;;  %s1175_s15 = smov (!%p29_p0, %s31_s15), %s962_s12 }
   0x8   : > { %1165 = sst [smem:[#allocation5_spill]] %s1173_s14  ;;  %p361_p3 = pnand %p834_p1, %p360_p2 }
   0x9   : > { %p33_p4 = scmp.ge.s32.totalorder %s1175_s15, 2  ;;  %p425_p5 = scmp.lt.s32.totalorder (!%p361_p3), %s954_s10, 1 }
   0xa   : > { %364 = sbr.rel (%p361_p3) target bundleno = 1321 (0x529), region = 56  ;;  %p427_p6 = scmp.lt.s32.totalorder (!%p361_p3), %s950_s30, 3 }
   0xb   : > { %s1177_s15 = smov (%p33_p4, %s1175_s15), 0  ;;  %p844_p7 = scmp.ne.s32.totalorder (!%p361_p3), %s950_s30, 0 }
   0xc   : > { %1166 = sst [smem:[#allocation6_spill]] %s1177_s15 }
  0x11   : > { %s1179_s10 = smov (!%p425_p5, %s954_s10), 1  ;;  %vm469_vm0 = vcmask (!%p844_p7), 261120   ;;  %v968_v0 = vmov (!%p844_p7), 0.0  }
  0x12   : > { %s428_s16 = scalar_select %p427_p6, %s950_s30, 3 }
  0x13   : > { %s1058_s17 = sshll.u32 %s1179_s10, 2  ;;  %468 = sbr.rel (%p844_p7) target bundleno = 26 (0x1a), region = 60  ;;  %470 = vst.msk [vmem:[#allocation2] sm:$0xff] (!%p844_p7), %vm469_vm0, %v968_v0 }
  0x14   : > { %s430_s21 = sadd.s32 %s1058_s17, %s428_s16  ;;  %s841_s22 = sshll.u32 %s428_s16, 2 }
  0x15   : > { %s1065_s23 = sshll.u32 %s430_s21, 2  ;;  %s1070_s26 = scalar_lea.vmem %s1155_s4, %s841_s22 }
  0x16   : > { %s432_s29 = scalar_lea.vmem %s1151_s0, %s1065_s23  ;;  %s440_s20 = scalar_lea.vmem %s1152_s1, %s1065_s23 }
  0x17   : > { %s448_s21 = scalar_lea.vmem %s1153_s2, %s1065_s23  ;;  %s459_s24 = scalar_lea.vmem %s1157_s6, %s1058_s17 }
  0x18   : > { %s463_s22 = scalar_lea.vmem %s1160_s9, %s1058_s17 }
  0x1a PF: > { %v472_v1 = vld [vmem:[%s440_s20] sm:$0xf]  ;;  %vm484_vm1 = vcmask 64512   ;;  %v969_v2 = vmov 0.0   ;;  %vm970_vm2 = vmmov 0   ;;  %s1167_s14 = scalar_lea.vmem %s1154_s3, %s1179_s10  ;;  %vm546_vm3 = vcmask 1043456  }
  0x1b   : > { %861 = vmatprep.subr.bf16.mxu0 %v969_v2  ;;  %v489_v3 = vsel %vm484_vm1, %v472_v1, 0  ;;  %863 = vmatprep.mubr.msk.bf16.mxu0 %vm970_vm2, %v969_v2  ;;  %v471_v4 = vld [vmem:[%s432_s29] sm:$0xf]  ;;  %vm640_vm4 = vcmask 261120   ;;  %p849_p8 = scmp.ne.s32.totalorder %s950_s30, 3 }
  0x1c   : > { %862 = vmatpush3.bf16.xpose.msra.mxu0 %v489_v3  ;;  %v474_v5 = vunpack.c.l.bf16 %v471_v4  ;;  %867 = vmatprep.subr.bf16.mxu1 %v969_v2  ;;  %v845_v8 = vld [vmem:[%s1167_s14] ss:$0 sm:$0xff]  ;;  %vm689_vm5 = vcmask (!%p849_p8), 257024  }
  0x1d   : > { %869 = vmatprep.mubr.msk.bf16.mxu1 %vm970_vm2, %v969_v2  ;;  %v473_v20 = vld [vmem:[%s448_s21] sm:$0xf] }
  0x1e   : > { %v475_v6 = vmul.f32 0.35355338, %v474_v5  ;;  %v548_v21 = vsel %vm546_vm3, %v473_v20, 0  ;;  %v592_v24 = vld [vmem:[%s1070_s26] sm:$0xf] }
  0x1f   : > { %868 = vmatpush3.bf16.msra.mxu1 %v548_v21  ;;  %v597_v26 = vsel %vm546_vm3, %v592_v24, 0  ;;  %v590_v33 = vld [vmem:[#allocation2] sm:$0xff] }
  0x20   : > { %v476_v7 = vpack.c.bf16 %v475_v6, %v475_v6  ;;  %873 = vmatprep.subr.bf16.mxu1 %v969_v2  ;;  %v850_v40 = vld [vmem:[%s1156_s5] ss:$0 sm:$0xff] (!%p849_p8) }
  0x21   : > { %v655_v41 = vld [vmem:[%s459_s24] sm:$0xf] (!%p849_p8) }
  0x22   : > { %v656_v43 = vunpack.c.l.bf16 (!%p849_p8), %v655_v41  ;;  %v851_v55 = vld [vmem:[%s1158_s7] ss:$0 sm:$0xff] (!%p849_p8) }
  0x23   : > { %864 = vmatmul.mubr.msk.bf16.vlgmr.msra.gmra.mrb[0].mxu0 %vm484_vm1, %v476_v7  ;;  %v852_v57 = vld [vmem:[%s1159_s8] ss:$0 sm:$0xff] (!%p849_p8) }
  0xf6   : > { %v525_v9 = vpop.f32.mrb[0].mxu0 }
  0xf7   : > { %v526_v10 = vadd.f32 %v845_v8, %v525_v9  ;;  %v865_v11 = vpop.f32.mrb[1].mxu0 }
  0xf8   : > { %v528_v12 = vpop.f32.mrb[2].mxu0 }
  0xf9   : > { %v866_v13 = vpop.f32.mrb[3].mxu0  ;;  %v531_v14 = vsel %vm484_vm1, %v526_v10, -inf }
  0xfa   : > { %532 = vmax.xlane.f32.xlu0 %v531_v14 }
 0x187   : > { %v533_v15 = vpop.xlane.xlu0 %532 }
 0x188   : > { %v534_v16 = vsub.f32 %v526_v10, %v533_v15 }
 0x18a   : > { %v535_v17 = vmul.f32 1.442695, %v534_v16 }
 0x18c   : > { %922 = vpow2.f32 %v535_v17 }
 0x196   : > { %v923_v18 = vpop.eup %922 }
 0x197   : > { %v537_v19 = vsel %vm484_vm1, %v923_v18, 0.0 }
 0x198   : > { %538 = vadd.xlane.f32.xlu0 %v537_v19 }
 0x225   : > { %v539_v22 = vpop.xlane.xlu0 %538 }
 0x226   : > { %924 = vrcp.f32 %v539_v22 }
 0x230   : > { %v925_v23 = vpop.eup %924 }
 0x231   : > { %v541_v25 = vmul.f32 %v925_v23, %v923_v18 }
 0x233   : > { %v542_v27 = vpack.c.bf16 %v541_v25, %v541_v25 }
 0x235   : > { %870 = vmatmul.mubr.msk.bf16.vlgmr.msra.gmra.mrb[0].mxu1 %vm484_vm1, %v542_v27 }
 0x236   : > { %874 = vmatpush3.bf16.msra.mxu1 %v597_v26  ;;  %875 = vmatprep.mubr.msk.bf16.mxu1 %vm970_vm2, %v969_v2 }
 0x308   : > { %v584_v28 = vpop.f32.mrb[0].mxu1 }
 0x309   : > { %v591_v29 = vpack.c.bf16 %v584_v28, %v584_v28  ;;  %v871_v30 = vpop.f32.mrb[1].mxu1 }
 0x30a   : > { %v587_v31 = vpop.f32.mrb[2].mxu1 }
 0x30b   : > { %v872_v32 = vpop.f32.mrb[3].mxu1  ;;  %876 = vmatmul.mubr.msk.bf16.vlgmr.msra.gmra.mrb[4].mxu1 %vm484_vm1, %v591_v29 }
 0x3db   : > { %645 = sbr.rel (%p849_p8) target bundleno = 1321 (0x529), region = 64 }
 0x3de   : > { %v633_v34 = vpop.f32.mrb[4].mxu1 }
 0x3df   : > { %v639_v35 = vadd.f32 %v633_v34, %v590_v33  ;;  %v877_v36 = vpop.f32.mrb[5].mxu1 }
 0x3e0   : > { %v636_v37 = vpop.f32.mrb[6].mxu1 }
 0x3e1   : > { %641 = vst.msk [vmem:[#allocation2] sm:$0xff] %vm640_vm4, %v639_v35  ;;  %v878_v38 = vpop.f32.mrb[7].mxu1 }
 0x3e8   : > { %v646_v39 = vld [vmem:[#allocation2] sm:$0xff] }
 0x3e9   : > { %v654_v42 = vadd.f32 %v850_v40, %v646_v39 }
 0x3eb   : > { %v657_v44 = vadd.f32 %v656_v43, %v654_v42 }
 0x3ed   : > { %v658_v45 = vsel %vm640_vm4, %v657_v44, 0.0 }
 0x3ee   : > { %659 = vadd.xlane.f32.xlu0 %v658_v45 }
 0x47b   : > { %v660_v46 = vpop.xlane.xlu0 %659 }
 0x47c   : > { %v662_v47 = vmul.f32 0.03125, %v660_v46 }
 0x47e   : > { %v663_v48 = vsub.f32 %v657_v44, %v662_v47 }
 0x480   : > { %v664_v49 = vmul.f32 %v663_v48, %v663_v48 }
 0x482   : > { %v665_v50 = vsel %vm640_vm4, %v664_v49, 0.0 }
 0x483   : > { %666 = vadd.xlane.f32.xlu0 %v665_v50 }
 0x510   : > { %v667_v51 = vpop.xlane.xlu0 %666 }
 0x511   : > { %v668_v52 = vmul.f32 0.03125, %v667_v51 }
 0x513   : > { %v669_v53 = vadd.f32 1e-12, %v668_v52 }
 0x515   : > { %926 = vrsqrt.f32 %v669_v53 }
 0x51f   : > { %v927_v54 = vpop.eup %926 }
 0x520   : > { %v671_v56 = vmul.f32 %v927_v54, %v663_v48 }
 0x522   : > { %v679_v58 = vmul.f32 %v851_v55, %v671_v56 }
 0x524   : > { %v687_v59 = vadd.f32 %v852_v57, %v679_v58 }
 0x526   : > { %v688_v60 = vpack.c.bf16 %v687_v59, %v687_v59 }
 0x528   : > { %690 = vst.msk [vmem:[%s463_s22] sm:$0xf] %vm689_vm5, %v688_v60 }
 0x529 PF: > { %s19_s13 = sadd.s32 1, %s966_s13   ;;  %s1168_s30 = sld [smem:[#allocation3_spill]] }
 0x52a   : > { %p16_p9 = scmp.ge.s32.totalorder %s19_s13, 10   ;;  %s1169_s10 = sld [smem:[#allocation4_spill]] }
 0x52b   : > { %s1170_s11 = sld [smem:[#allocation5_spill]]  ;;  %s1171_s12 = sld [smem:[#allocation6_spill]] }
 0x52c   :  { %18 = sbr.rel (!%p16_p9) target bundleno = 3 (0x3), region = 109 }

// kernel: bert_qa_forward.39
= control target key start
LH: loop header
LB: loop body
LE: loop exit
PB: predicated region body
PF: predicated region fallthrough
CT: control target
= control target key end

     0   :  { %vm19_vm0 = vcmask 523264   ;;  %v173_v0 = vmov 0.0   ;;  %vm174_vm1 = vmmov 0   ;;  %vm47_vm2 = vcmask 261120   ;;  %s217_s1 = inlined_call_operand.vmem [shape: bf16[32,64], index: 1, kind: input, shape index: {}]   ;;  %s218_s0 = inlined_call_operand.vmem [shape: bf16[16,32], index: 0, kind: input, shape index: {}]   ;;  %s219_s2 = inlined_call_operand.vmem [shape: f32[1,64], index: 2, kind: input, shape index: {}]   ;;  %s220_s3 = inlined_call_operand.vmem [shape: bf16[16,64], index: 3, kind: output, shape index: {}]  }
   0x1   :  { %156 = vmatprep.subr.bf16.mxu0 %v173_v0  ;;  %v166_v1 = vld [vmem:[%s217_s1] sm:$0xff]   ;;  %160 = vmatprep.mubr.msk.bf16.mxu0 %vm174_vm1, %v173_v0  ;;  %20 = vst.msk [vmem:[#allocation2] sm:$0xff] %vm19_vm0, %v173_v0  ;;  %21 = vst.msk [vmem:[#allocation2 + $0x8] sm:$0xff] %vm19_vm0, %v173_v0  ;;  %v167_v2 = vld [vmem:[%s217_s1 + $0x8] sm:$0xff]   ;;  %vm137_vm3 = vcmask 519168  }
   0x2   :  { %157 = vmatpush3.bf16.msra.mxu0 %v166_v1  ;;  %v168_v3 = vld [vmem:[%s218_s0] sm:$0xff]  }
   0x3   :  { %158 = vmatprep.subr.bf16.mxu0 %v173_v0  ;;  %v148_v12 = vld [vmem:[%s219_s2] ss:$0 sm:$0xff] }
   0x6   :  { %159 = vmatpush3.bf16.msra.mxu0 %v167_v2 }
   0x8   :  { %v22_v4 = vld [vmem:[#allocation2] sm:$0xff]  ;;  %v23_v6 = vld [vmem:[#allocation2 + $0x8] sm:$0xff] }
   0x9   :  { %161 = vmatmul.mubr.msk.bf16.vlgmr.msra.gmra.mrb[0].mxu0 %vm47_vm2, %v168_v3 }
  0xdc   :  { %v85_v5 = vpop.f32.mrb[0].mxu0 }
  0xdd   :  { %v92_v7 = vadd.f32 %v85_v5, %v22_v4  ;;  %v162_v8 = vpop.f32.mrb[1].mxu0 }
  0xde   :  { %v88_v9 = vpop.f32.mrb[2].mxu0 }
  0xdf   :  { %95 = vst.msk [vmem:[#allocation2] sm:$0xff] %vm19_vm0, %v92_v7  ;;  %v93_v10 = vadd.f32 %v88_v9, %v23_v6  ;;  %v163_v11 = vpop.f32.mrb[3].mxu0 }
  0xe1   :  { %96 = vst.msk [vmem:[#allocation2 + $0x8] sm:$0xff] %vm19_vm0, %v93_v10 }
  0xe6   :  { %v100_v13 = vld [vmem:[#allocation2] sm:$0xff] }
  0xe7   :  { %v109_v14 = vadd.f32 %v148_v12, %v100_v13 }
  0xe8   :  { %v101_v15 = vld [vmem:[#allocation2 + $0x8] sm:$0xff] }
  0xe9   :  { %v111_v16 = vmul.f32 %v109_v14, %v109_v14  ;;  %v110_v17 = vadd.f32 %v148_v12, %v101_v15 }
  0xeb   :  { %v113_v18 = vmul.f32 %v111_v16, %v109_v14  ;;  %v112_v19 = vmul.f32 %v110_v17, %v110_v17 }
  0xed   :  { %v115_v20 = vmul.f32 0.044715, %v113_v18  ;;  %v114_v21 = vmul.f32 %v112_v19, %v110_v17 }
  0xef   :  { %v117_v22 = vadd.f32 %v115_v20, %v109_v14  ;;  %v116_v23 = vmul.f32 0.044715, %v114_v21 }
  0xf1   :  { %v119_v24 = vmul.f32 0.7978846, %v117_v22  ;;  %v118_v25 = vadd.f32 %v116_v23, %v110_v17 }
  0xf3   :  { %169 = vtanh.f32 %v119_v24  ;;  %v120_v26 = vmul.f32 0.7978846, %v118_v25 }
  0xf5   :  { %171 = vtanh.f32 %v120_v26 }
  0xfd   :  { %v170_v27 = vpop.eup %169 }
  0xfe   :  { %v123_v28 = vadd.f32 1.0, %v170_v27 }
  0xff   :  { %v172_v29 = vpop.eup %171 }
 0x100   :  { %v125_v30 = vmul.f32 0.5, %v123_v28  ;;  %v124_v31 = vadd.f32 1.0, %v172_v29 }
 0x102   :  { %v127_v32 = vmul.f32 %v125_v30, %v109_v14  ;;  %v126_v33 = vmul.f32 0.5, %v124_v31 }
 0x104   :  { %v151_v34 = vpack.c.bf16 %v127_v32, %v127_v32  ;;  %v128_v35 = vmul.f32 %v126_v33, %v110_v17 }
 0x106   :  { %138 = vst.msk [vmem:[%s220_s3] sm:$0xf] %vm137_vm3, %v151_v34  ;;  %v152_v36 = vpack.c.bf16 %v128_v35, %v128_v35 }
 0x108   :  { %139 = vst.msk [vmem:[%s220_s3 + $0x4] sm:$0xf] %vm137_vm3, %v152_v36 }

// kernel: bert_qa_forward.40
= control target key start
LH: loop header
LB: loop body
LE: loop exit
PB: predicated region body
PF: predicated region fallthrough
CT: control target
= control target key end

     0   :  { %vm28_vm0 = vcmask 261120   ;;  %v247_v0 = vmov 0.0   ;;  %vm248_vm1 = vmmov 0   ;;  %vm72_vm2 = vcmask 523264   ;;  %s325_s1 = inlined_call_operand.vmem [shape: bf16[64,32], index: 1, kind: input, shape index: {}]   ;;  %s326_s0 = inlined_call_operand.vmem [shape: bf16[16,64], index: 0, kind: input, shape index: {}]   ;;  %s327_s3 = inlined_call_operand.vmem [shape: bf16[16,32], index: 3, kind: input, shape index: {}]   ;;  %s328_s2 = inlined_call_operand.vmem [shape: f32[1,32], index: 2, kind: input, shape index: {}]   ;;  %s329_s4 = inlined_call_operand.vmem [shape: f32[1,32], index: 4, kind: input, shape index: {}]   ;;  %s330_s5 = inlined_call_operand.vmem [shape: f32[1,32], index: 5, kind: input, shape index: {}]   ;;  %s331_s6 = inlined_call_operand.vmem [shape: bf16[16,32], index: 6, kind: output, shape index: {}]  }
   0x1   :  { %224 = vmatprep.subr.bf16.mxu0 %v247_v0  ;;  %v238_v1 = vld [vmem:[%s325_s1] sm:$0xff]   ;;  %232 = vmatprep.mubr.msk.bf16.mxu0 %vm248_vm1, %v247_v0  ;;  %29 = vst.msk [vmem:[#allocation2] sm:$0xff] %vm28_vm0, %v247_v0  ;;  %30 = vst.msk [vmem:[#allocation2 + $0x8] sm:$0xff] %vm28_vm0, %v247_v0  ;;  %v239_v2 = vld [vmem:[%s325_s1 + $0x8] sm:$0xff]   ;;  %vm195_vm3 = vcmask 257024  }
   0x2   :  { %225 = vmatpush3.bf16.msra.mxu0 %v238_v1  ;;  %v240_v3 = vld [vmem:[%s325_s1 + $0x10] sm:$0xff]   ;;  %v241_v4 = vld [vmem:[%s325_s1 + $0x18] sm:$0xff]   ;;  %v242_v5 = vld [vmem:[%s326_s0] sm:$0xff]  }
   0x3   :  { %226 = vmatprep.subr.bf16.mxu0 %v247_v0  ;;  %v216_v14 = vld [vmem:[%s327_s3] sm:$0xff]  }
   0x4   :  { %v208_v15 = vld [vmem:[%s328_s2] ss:$0 sm:$0xff]  ;;  %v217_v16 = vunpack.c.l.bf16 %v216_v14  ;;  %v218_v19 = vunpack.c.h.bf16 %v216_v14 }
   0x5   :  { %v209_v43 = vld [vmem:[%s329_s4] ss:$0 sm:$0xff] }
   0x6   :  { %227 = vmatpush3.bf16.msra.mxu0 %v239_v2  ;;  %v210_v45 = vld [vmem:[%s330_s5] ss:$0 sm:$0xff] }
   0x7   :  { %228 = vmatprep.subr.bf16.mxu0 %v247_v0 }
   0x8   :  { %v31_v6 = vld [vmem:[#allocation2] sm:$0xff]  ;;  %v32_v8 = vld [vmem:[#allocation2 + $0x8] sm:$0xff] }
   0xa   :  { %229 = vmatpush3.bf16.msra.mxu0 %v240_v3 }
   0xb   :  { %230 = vmatprep.subr.bf16.mxu0 %v247_v0 }
   0xe   :  { %231 = vmatpush3.bf16.msra.mxu0 %v241_v4 }
  0x11   :  { %233 = vmatmul.mubr.msk.bf16.vlgmr.msra.gmra.mrb[0].mxu0 %vm72_vm2, %v242_v5 }
  0xe4   :  { %v110_v7 = vpop.f32.mrb[0].mxu0 }
  0xe5   :  { %v117_v9 = vadd.f32 %v110_v7, %v31_v6  ;;  %v234_v10 = vpop.f32.mrb[1].mxu0 }
  0xe6   :  { %v113_v11 = vpop.f32.mrb[2].mxu0 }
  0xe7   :  { %120 = vst.msk [vmem:[#allocation2] sm:$0xff] %vm28_vm0, %v117_v9  ;;  %v118_v12 = vadd.f32 %v113_v11, %v32_v8  ;;  %v235_v13 = vpop.f32.mrb[3].mxu0 }
  0xe9   :  { %121 = vst.msk [vmem:[#allocation2 + $0x8] sm:$0xff] %vm28_vm0, %v118_v12 }
  0xee   :  { %v125_v17 = vld [vmem:[#allocation2] sm:$0xff] }
  0xef   :  { %v134_v18 = vadd.f32 %v208_v15, %v125_v17 }
  0xf0   :  { %v126_v20 = vld [vmem:[#allocation2 + $0x8] sm:$0xff] }
  0xf1   :  { %v140_v21 = vadd.f32 %v217_v16, %v134_v18  ;;  %v135_v22 = vadd.f32 %v208_v15, %v126_v20 }
  0xf3   :  { %v142_v23 = vsel %vm28_vm0, %v140_v21, 0.0  ;;  %v141_v24 = vadd.f32 %v218_v19, %v135_v22 }
  0xf4   :  { %143 = vadd.xlane.f32.xlu0 %v142_v23 }
  0xf5   :  { %v145_v25 = vsel %vm28_vm0, %v141_v24, 0.0 }
  0xf8   :  { %146 = vadd.xlane.f32.xlu0 %v145_v25 }
 0x181   :  { %v144_v26 = vpop.xlane.xlu0 %143 }
 0x182   :  { %v149_v27 = vmul.f32 0.03125, %v144_v26 }
 0x184   :  { %v151_v28 = vsub.f32 %v140_v21, %v149_v27 }
 0x185   :  { %v147_v29 = vpop.xlane.xlu0 %146 }
 0x186   :  { %v150_v30 = vmul.f32 0.03125, %v147_v29  ;;  %v153_v31 = vmul.f32 %v151_v28, %v151_v28 }
 0x188   :  { %v152_v32 = vsub.f32 %v141_v24, %v150_v30  ;;  %v155_v33 = vsel %vm28_vm0, %v153_v31, 0.0 }
 0x189   :  { %156 = vadd.xlane.f32.xlu1 %v155_v33 }
 0x18a   :  { %v154_v34 = vmul.f32 %v152_v32, %v152_v32 }
 0x18c   :  { %v158_v35 = vsel %vm28_vm0, %v154_v34, 0.0 }
 0x18d   :  { %159 = vadd.xlane.f32.xlu1 %v158_v35 }
 0x216   :  { %v157_v36 = vpop.xlane.xlu1 %156 }
 0x217   :  { %v161_v37 = vmul.f32 0.03125, %v157_v36 }
 0x219   :  { %v163_v38 = vadd.f32 1e-12, %v161_v37 }
 0x21a   :  { %v160_v39 = vpop.xlane.xlu1 %159 }
 0x21b   :  { %243 = vrsqrt.f32 %v163_v38  ;;  %v162_v40 = vmul.f32 0.03125, %v160_v39 }
 0x21d   :  { %v164_v41 = vadd.f32 1e-12, %v162_v40 }
 0x21f   :  { %245 = vrsqrt.f32 %v164_v41 }
 0x225   :  { %v244_v42 = vpop.eup %243 }
 0x226   :  { %v167_v44 = vmul.f32 %v244_v42, %v151_v28 }
 0x228   :  { %v176_v46 = vmul.f32 %v209_v43, %v167_v44 }
 0x229   :  { %v246_v47 = vpop.eup %245 }
 0x22a   :  { %v185_v48 = vadd.f32 %v210_v45, %v176_v46  ;;  %v168_v49 = vmul.f32 %v246_v47, %v152_v32 }
 0x22c   :  { %v213_v50 = vpack.c.bf16 %v185_v48, %v185_v48  ;;  %v177_v51 = vmul.f32 %v209_v43, %v168_v49 }
 0x22e   :  { %196 = vst.msk [vmem:[%s331_s6] sm:$0xf] %vm195_vm3, %v213_v50  ;;  %v186_v52 = vadd.f32 %v210_v45, %v177_v51 }
 0x230   :  { %v214_v53 = vpack.c.bf16 %v186_v52, %v186_v52 }
 0x232   :  { %197 = vst.msk [vmem:[%s331_s6 + $0x4] sm:$0xf] %vm195_vm3, %v214_v53 }

// kernel: bert_qa_forward.49
= control target key start
LH: loop header
LB: loop body
LE: loop exit
PB: predicated region body
PF: predicated region fallthrough
CT: control target
= control target key end

     0   :  { %s830_s23 = smov 0   ;;  %s935_s0 = inlined_call_operand.vmem [shape: bf16[2,32,32], index: 0, kind: input, shape index: {}]   ;;  %s936_s1 = inlined_call_operand.vmem [shape: bf16[2,32,32], index: 1, kind: input, shape index: {}]   ;;  %s937_s2 = inlined_call_operand.vmem [shape: bf16[32,256], index: 2, kind: input, shape index: {}]   ;;  %s938_s3 = inlined_call_operand.vmem [shape: f32[1,256], index: 3, kind: input, shape index: {}]   ;;  %s939_s4 = inlined_call_operand.vmem [shape: bf16[256,1], index: 4, kind: input, shape index: {}]   ;;  %s940_s5 = inlined_call_operand.<no memory space> [shape: f32[1,1], index: 5, kind: input, shape index: {}]   ;;  %s941_s6 = inlined_call_operand.vmem [shape: f32[2,1,1], index: 6, kind: output, shape index: {}]  }
   0x1   :  { %v11_v0 = vstv %s940_s5 }
   0x2   :  { %12 = vst [vmem:[#allocation2] sm:$0x1] %v11_v0 }
   0x3 LB: > { %s669_s24 = sadd.s32 4294967295, %s789_s23   ;;  %p673_p0 = scmp.ge.s32.totalorder %s789_s23, 1  ;;  %s789_s23 = sphi %s830_s23, %s18_s23  }
   0x4   : > { %p224_p1 = scmp.lt.s32.totalorder %s789_s23, 3 }
   0x6   : > { %p225_p2 = pnand %p673_p0, %p224_p1 }
   0x7   : > { %v753_v1 = vld [vmem:[%s937_s2 + $0x4] ss:$8 sps:$4 sm:$0xff] (!%p225_p2)   ;;  %p257_p3 = scmp.lt.s32.totalorder (!%p225_p2), %s669_s24, 1  ;;  %v755_v2 = vld [vmem:[%s937_s2] ss:$8 sps:$4 sm:$0xff] (!%p225_p2)   ;;  %v791_v3 = vmov (!%p225_p2), 0  }
   0x8   : > { %228 = sbr.rel (%p225_p2) target bundleno = 539 (0x21b), region = 44  ;;  %422 = vmatprep.mubr.bf16.mxu0 (!%p225_p2), %v791_v3  ;;  %390 = vmatprep.subr.bf16.mxu0 (!%p225_p2), %v753_v1  ;;  %v756_v4 = vld [vmem:[%s937_s2 + $0x14] ss:$8 sps:$4 sm:$0xff] (!%p225_p2)   ;;  %v758_v5 = vld [vmem:[%s937_s2 + $0x10] ss:$8 sps:$4 sm:$0xff] (!%p225_p2)   ;;  %v759_v6 = vld [vmem:[%s939_s4 + $0x40] sm:$0xff] (!%p225_p2)  }
   0x9   : > { %391 = vmatpush1.bf16.msra.mxu0 (!%p225_p2), %v755_v2  ;;  %722 = vmatprep.subr.bf16.mxu1 (!%p225_p2), %v759_v6  ;;  %v760_v7 = vld [vmem:[%s939_s4] sm:$0xff] (!%p225_p2)   ;;  %v761_v8 = vld [vmem:[%s939_s4 + $0x48] sm:$0xff] (!%p225_p2)   ;;  %vm291_vm0 = vcmask (!%p225_p2), 261120   ;;  %v763_v19 = vld [vmem:[%s939_s4 + $0x50] sm:$0xff] (!%p225_p2)   ;;  %vm608_vm3 = vcmask (!%p225_p2), 0  }
   0xa   : > { %392 = vmatprep.subr.bf16.mxu0 (!%p225_p2), %v756_v4  ;;  %723 = vmatpush3.bf16.msra.mxu1 (!%p225_p2), %v760_v7  ;;  %v762_v17 = vld [vmem:[%s939_s4 + $0x8] sm:$0xff] (!%p225_p2)   ;;  %v764_v27 = vld [vmem:[%s939_s4 + $0x10] sm:$0xff] (!%p225_p2)   ;;  %v765_v30 = vld [vmem:[%s939_s4 + $0x58] sm:$0xff] (!%p225_p2)  }
   0xb   : > { %724 = vmatprep.subr.bf16.mxu1 (!%p225_p2), %v761_v8  ;;  %v766_v38 = vld [vmem:[%s939_s4 + $0x18] sm:$0xff] (!%p225_p2)   ;;  %v767_v42 = vld [vmem:[%s939_s4 + $0x60] sm:$0xff] (!%p225_p2)   ;;  %v769_v50 = vld [vmem:[%s939_s4 + $0x68] sm:$0xff] (!%p225_p2)  }
   0xc   : > { %v768_v48 = vld [vmem:[%s939_s4 + $0x20] sm:$0xff] (!%p225_p2)   ;;  %v770_v56 = vld [vmem:[%s939_s4 + $0x28] sm:$0xff] (!%p225_p2)   ;;  %v771_v58 = vld [vmem:[%s939_s4 + $0x70] sm:$0xff] (!%p225_p2)  }
   0xd   : > { %393 = vmatpush1.bf16.msra.mxu0 (!%p225_p2), %v758_v5 }
   0xe   : > { %725 = vmatpush3.bf16.msra.mxu1 (!%p225_p2), %v762_v17 }
   0xf   : > { %s943_s24 = smov (!%p257_p3, %s669_s24), 1  ;;  %726 = vmatprep.subr.bf16.mxu1 %v763_v19 }
  0x10   : > { %s702_s10 = sshll.u32 %s943_s24, 4  ;;  %s269_s29 = scalar_lea.vmem %s941_s6, %s943_s24 }
  0x11   : > { %s261_s15 = scalar_lea.vmem %s935_s0, %s702_s10  ;;  %s266_s18 = scalar_lea.vmem %s936_s1, %s702_s10 }
  0x12   : > { %v705_v9 = vld [vmem:[%s261_s15] sm:$0xff]   ;;  %v720_v10 = vld [vmem:[%s261_s15 + $0x8] sm:$0xff]   ;;  %727 = vmatpush3.bf16.msra.mxu1 %v764_v27 }
  0x13   : > { %v713_v11 = vld [vmem:[%s266_s18] sm:$0xff]   ;;  %v706_v12 = vunpack.c.l.bf16 %v705_v9  ;;  %v707_v13 = vunpack.c.h.bf16 %v705_v9  ;;  %v710_v14 = vunpack.c.l.bf16 %v720_v10  ;;  %v868_v15 = vunpack.c.h.bf16 %v720_v10  ;;  %v721_v16 = vld [vmem:[%s266_s18 + $0x8] sm:$0xff]   ;;  %728 = vmatprep.subr.bf16.mxu1 %v765_v30  ;;  %v774_v30 = vld [vmem:[%s939_s4 + $0x38] sm:$0xff]  }
  0x14   : > { %v714_v18 = vunpack.c.l.bf16 %v713_v11  ;;  %v715_v20 = vunpack.c.h.bf16 %v713_v11  ;;  %v718_v24 = vunpack.c.l.bf16 %v721_v16  ;;  %v719_v25 = vunpack.c.h.bf16 %v721_v16 }
  0x15   : > { %v305_v21 = vmul.f32 %v706_v12, %v706_v12  ;;  %v306_v22 = vmul.f32 %v707_v13, %v707_v13  ;;  %v307_v23 = vmul.f32 %v710_v14, %v710_v14  ;;  %v308_v26 = vmul.f32 %v868_v15, %v868_v15 }
  0x16   : > { %v322_v33 = vmul.f32 %v714_v18, %v714_v18  ;;  %v323_v34 = vmul.f32 %v715_v20, %v715_v20  ;;  %v324_v36 = vmul.f32 %v718_v24, %v718_v24  ;;  %v325_v37 = vmul.f32 %v719_v25, %v719_v25  ;;  %729 = vmatpush3.bf16.msra.mxu1 %v766_v38 }
  0x17   : > { %v309_v28 = vsel %vm291_vm0, %v305_v21, 0.0  ;;  %v310_v29 = vsel %vm291_vm0, %v306_v22, 0.0  ;;  %v312_v31 = vsel %vm291_vm0, %v307_v23, 0.0  ;;  %v314_v35 = vsel %vm291_vm0, %v308_v26, 0.0  ;;  %730 = vmatprep.subr.bf16.mxu1 %v767_v42 }
  0x18   : > { %v311_v32 = vadd.f32 %v310_v29, %v309_v28  ;;  %v326_v40 = vsel %vm291_vm0, %v322_v33, 0.0  ;;  %v327_v41 = vsel %vm291_vm0, %v323_v34, 0.0  ;;  %v329_v44 = vsel %vm291_vm0, %v324_v36, 0.0  ;;  %v772_v28 = vld [vmem:[%s939_s4 + $0x30] sm:$0xff]   ;;  %v773_v29 = vld [vmem:[%s939_s4 + $0x78] sm:$0xff]  }
  0x19   : > { %v328_v43 = vadd.f32 %v327_v41, %v326_v40  ;;  %v331_v46 = vsel %vm291_vm0, %v325_v37, 0.0  ;;  %v287_v52 = vmul.f32 %v714_v18, %v706_v12  ;;  %v288_v53 = vmul.f32 %v715_v20, %v707_v13  ;;  %v355_v34 = vld [vmem:[%s938_s3] sm:$0x3] }
  0x1a   : > { %v313_v39 = vadd.f32 %v312_v31, %v311_v32  ;;  %731 = vmatpush3.bf16.msra.mxu1 %v768_v48  ;;  %v289_v60 = vmul.f32 %v718_v24, %v710_v14  ;;  %v290_v4 = vmul.f32 %v719_v25, %v868_v15  ;;  %v377_v31 = vlaneseq }
  0x1b   : > { %v330_v47 = vadd.f32 %v329_v44, %v328_v43  ;;  %732 = vmatprep.subr.bf16.mxu1 %v769_v50  ;;  %v292_v61 = vsel %vm291_vm0, %v287_v52, 0.0  ;;  %v293_v62 = vsel %vm291_vm0, %v288_v53, 0.0 }
  0x1c   : > { %v315_v45 = vadd.f32 %v314_v35, %v313_v39  ;;  %v294_v2 = vadd.f32 %v293_v62, %v292_v61  ;;  %v295_v5 = vsel %vm291_vm0, %v289_v60, 0.0  ;;  %v297_v10 = vsel %vm291_vm0, %v290_v4, 0.0 }
  0x1d   : > { %v332_v51 = vadd.f32 %v331_v46, %v330_v47  ;;  %v378_v32 = vshrl.u32 %v377_v31, 7  ;;  %v465_v47 = vld [vmem:[#allocation2] sm:$0x1] }
  0x1e   : > { %v316_v49 = vrot.slane %v315_v45, 4  ;;  %733 = vmatpush3.bf16.msra.mxu1 %v770_v56  ;;  %v296_v8 = vadd.f32 %v295_v5, %v294_v2 }
  0x1f   : > { %v333_v55 = vrot.slane %v332_v51, 4  ;;  %734 = vmatprep.subr.bf16.mxu1 %v771_v58  ;;  %v379_v33 = vsub.s32 0, %v378_v32  ;;  %v383_v35 = vsub.s32 1, %v378_v32 }
  0x20   : > { %v317_v54 = vadd.f32 %v316_v49, %v315_v45  ;;  %v298_v12 = vadd.f32 %v297_v10, %v296_v8 }
  0x21   : > { %v334_v59 = vadd.f32 %v333_v55, %v332_v51  ;;  %v380_v36 = vrot.slane %v355_v34, %v379_v33  ;;  %v384_v37 = vrot.slane %v355_v34, %v383_v35 }
  0x22   : > { %v318_v57 = vrot.slane %v317_v54, 2  ;;  %v299_v13 = vrot.slane %v298_v12, 4  ;;  %735 = vmatpush3.bf16.msra.mxu1 %v772_v28 }
  0x23   : > { %v335_v0 = vrot.slane %v334_v59, 2  ;;  %736 = vmatprep.subr.bf16.mxu1 %v773_v29 }
  0x24   : > { %v319_v63 = vadd.f32 %v318_v57, %v317_v54  ;;  %v300_v14 = vadd.f32 %v299_v13, %v298_v12 }
  0x25   : > { %v336_v3 = vadd.f32 %v335_v0, %v334_v59 }
  0x26   : > { %v320_v1 = vrot.slane %v319_v63, 1  ;;  %v301_v19 = vrot.slane %v300_v14, 2  ;;  %737 = vmatpush3.bf16.msra.mxu1 %v774_v30 }
  0x27   : > { %v337_v7 = vrot.slane %v336_v3, 1 }
  0x28   : > { %v321_v6 = vadd.f32 %v320_v1, %v319_v63  ;;  %v302_v22 = vadd.f32 %v301_v19, %v300_v14 }
  0x29   : > { %v338_v9 = vadd.f32 %v337_v7, %v336_v3 }
  0x2a   : > { %v303_v23 = vrot.slane %v302_v22, 1 }
  0x2b   : > { %v339_v11 = vmul.f32 %v338_v9, %v321_v6 }
  0x2c   : > { %v304_v24 = vadd.f32 %v303_v23, %v302_v22 }
  0x2d   : > { %775 = vrsqrt.f32 %v339_v11  ;;  %vm342_vm1 = vcmp.eq.f32.partialorder %v339_v11, inf  ;;  %v345_v17 = vand.u32 2147483648, %v339_v11  ;;  %vm344_vm2 = vcmp.eq.f32.partialorder %v339_v11, 0.0 }
  0x37   : > { %v776_v16 = vpop.eup %775 }
  0x38   : > { %v341_v18 = vmul.f32 %v776_v16, %v339_v11 }
  0x3a   : > { %v343_v15 = vsel %vm342_vm1, %v339_v11, %v341_v18 }
  0x3b   : > { %v346_v20 = vsel %vm344_vm2, %v345_v17, %v343_v15 }
  0x3c   : > { %v347_v21 = vmax.f32 %v346_v20, 1e-08 }
  0x3e   : > { %777 = vrcp.f32 %v347_v21 }
  0x48   : > { %v778_v25 = vpop.eup %777 }
  0x49   : > { %v349_v26 = vmul.f32 %v778_v25, %v304_v24 }
  0x4b   : > { %v350_v27 = vpack.c.bf16 %v349_v26, %v349_v26 }
  0x4d   : > { %682 = vmatmul.mubr.msk.bf16.vlgmr.msra.gmra.mrb[0].mxu0 %vm291_vm0, %v350_v27 }
 0x120   : > { %v424_v38 = vpop.f32.mrb[0].mxu0 }
 0x121   : > { %v425_v39 = vadd.f32 %v424_v38, %v380_v36  ;;  %v426_v40 = vpop.f32.mrb[1].mxu0 }
 0x122   : > { %v428_v41 = vpop.f32.mrb[2].mxu0  ;;  %v427_v42 = vadd.f32 %v426_v40, %v384_v37 }
 0x123   : > { %v429_v43 = vpop.f32.mrb[3].mxu0  ;;  %v431_v45 = vpack.c.bf16 %v425_v39, %v425_v39 }
 0x124   : > { %v432_v44 = vpack.c.bf16 %v427_v42, %v427_v42 }
 0x126   : > { %594 = vmatprep.mubr.bf16.mxu1 %v432_v44 }
 0x127   : > { %595 = vmatmul.mubr.bf16.vlgmr.msra.gmra.mrb[0].mxu1 %v431_v45 }
 0x1fa   : > { %v738_v46 = vpop.f32.mrb[0].mxu1 }
 0x1fb   : > { %v739_v48 = vpop.f32.mrb[1].mxu1 }
 0x1fc   : > { %v740_v49 = vadd.f32 %v739_v48, %v738_v46  ;;  %v741_v50 = vpop.f32.mrb[2].mxu1 }
 0x1fd   : > { %v742_v51 = vpop.f32.mrb[3].mxu1 }
 0x1fe   : > { %v597_v52 = vadd.f32 %v740_v49, %v465_v47 }
 0x200   : > { %v699_v53 = vmul.f32 -1.442695, %v597_v52 }
 0x202   : > { %779 = vpow2.f32 %v699_v53 }
 0x20c   : > { %v780_v54 = vpop.eup %779 }
 0x20d   : > { %v605_v55 = vadd.f32 1.0, %v780_v54 }
 0x20f   : > { %781 = vrcp.f32 %v605_v55 }
 0x219   : > { %v782_v56 = vpop.eup %781 }
 0x21a   : > { %609 = vst.msk [vmem:[%s269_s29] sm:$0x1] %vm608_vm3, %v782_v56 }
 0x21b PF: > { %s18_s23 = sadd.s32 1, %s789_s23  }
 0x21c   : > { %p15_p4 = scmp.ge.s32.totalorder %s18_s23, 4  }
 0x21e   :  { %17 = sbr.rel (!%p15_p4) target bundleno = 3 (0x3), region = 77 }

</bundles_post_ra>
